<compile_context>
chip_gen: v7x
topology: tpu7x:2x2x1
jax: 0.10.0
libtpu: 0.0.40
codegen_flags: <defaults>
</compile_context>

<pallas_src>
import jax
import jax.numpy as jnp
from jax.experimental import pallas as pl
from jax.experimental.pallas import tpu as pltpu


_EPS = 1e-5   # PyTorch BatchNorm1d default eps
_PAD = 8      # activations stored at sublane offset 8; row 7 = conv left pad
_C = 32       # channel count of every conv layer


# ----------------------------------------------------------------------------
# Single fused Pallas kernel: 4 x (conv + BN + ReLU) + Linear, all in VMEM
# ----------------------------------------------------------------------------
def _fused_forward_kernel(xcol_ref, p_ref, out_ref, a1, a2, a3, tap):
    """Entire network in one kernel invocation.

    xcol_ref : (L/2, 3) bf16 im2col of the input (built in the wrapper).
    p_ref    : (128, 128) f32 packed parameter block (see make_params).
    a1/a2/a3 : (L_i + 8, 32) f32 activation buffers; rows 0..7 zero, data at
               rows 8.. so stores are aligned and row 7 is the conv left pad.
    tap      : (128, 96) f32 slab holding the 3 gathered taps of one layer.
    """
    # Conv weights: cast once per layer to bf16 for the MXU.
    w1 = p_ref[0:3,  96:128].astype(jnp.bfloat16)   # (3, 32)
    w2 = p_ref[0:96,  0:32 ].astype(jnp.bfloat16)   # (96, 32)
    w3 = p_ref[0:96, 32:64 ].astype(jnp.bfloat16)
    w4 = p_ref[0:96, 64:96 ].astype(jnp.bfloat16)

    def bn_relu(acc, layer):
        # Folded training-mode BatchNorm1d (biased variance over N*L, N=1)
        # as two independent reductions + one FMA, then ReLU.
        inv_n = 1.0 / acc.shape[0]
        mean = jnp.sum(acc, axis=0, keepdims=True) * inv_n
        ex2 = jnp.sum(acc * acc, axis=0, keepdims=True) * inv_n
        var = ex2 - mean * mean
        g = p_ref[8 + layer:9 + layer, 96:128]        # (1, 32)
        b = p_ref[16 + layer:17 + layer, 96:128]      # (1, 32)
        scale = g * jax.lax.rsqrt(var + _EPS)
        shift = b - mean * scale
        return jnp.maximum(acc * scale + shift, 0.0)

    def store(dst, y):
        dst[0:_PAD, :] = jnp.zeros((_PAD, dst.shape[1]), jnp.float32)  # pad rows
        dst[_PAD:, :] = y                                              # aligned

    def conv_bn_relu(src, w_bf16, layer):
        l_out = (src.shape[0] - _PAD) // 2
        # Gather the 3 stride-2 taps into one lane-contiguous (l_out, 96) slab.
        # Buffer row (7 + k + 2j)  <->  input position 2j + k - 1.
        for k in range(3):
            tap[0:l_out, k * _C:(k + 1) * _C] = \
                src[pl.ds(_PAD - 1 + k, l_out, stride=2), :]
        # Single K=96 MXU dot (bf16 in, f32 accumulate).
        acc = jnp.dot(tap[0:l_out, :].astype(jnp.bfloat16), w_bf16,
                      preferred_element_type=jnp.float32)
        return bn_relu(acc, layer)

    # Layer 1: im2col already done in the wrapper -> one (L/2,3)@(3,32) dot.
    y1 = bn_relu(jnp.dot(xcol_ref[...], w1, preferred_element_type=jnp.float32), 0)
    store(a1, y1)
    store(a2, conv_bn_relu(a1, w2, 1))
    store(a3, conv_bn_relu(a2, w3, 2))
    y4 = conv_bn_relu(a3, w4, 3)                      # (32, 32)

    # Linear(32, 8) over the feature (L) axis, fused as the epilogue.
    # Computed transposed so no in-kernel transpose is needed:
    #   out_t[o, c] = sum_l W[o, l] * y4[l, c] + b[o]
    lin_w = p_ref[24:32, 96:128]                      # (8, 32)
    lin_b = p_ref[40:48, 96:97]                       # (8, 1)
    out_ref[...] = (jnp.dot(lin_w, y4, preferred_element_type=jnp.float32)
                    + lin_b)


def _fused_pallas_call(l0):
    assert l0 == 512, "Linear(32, 8) requires feature length 32 (i.e. L0 == 512)"
    l1, l2, l3 = l0 // 2, l0 // 4, l0 // 8
    vmem = pl.BlockSpec(memory_space=pltpu.MemorySpace.VMEM)
    return pl.pallas_call(
        _fused_forward_kernel,
        out_shape=jax.ShapeDtypeStruct((8, 32), jnp.float32),   # (out_feat, C)
        in_specs=[vmem, vmem],
        out_specs=vmem,
        scratch_shapes=[
            pltpu.VMEM((l1 + _PAD, _C), jnp.float32),   # a1  (264, 32)
            pltpu.VMEM((l2 + _PAD, _C), jnp.float32),   # a2  (136, 32)
            pltpu.VMEM((l3 + _PAD, _C), jnp.float32),   # a3  ( 72, 32)
            pltpu.VMEM((l2, 3 * _C), jnp.float32),      # tap slab (128, 96)
        ],
        cost_estimate=pl.CostEstimate(flops=1_441_792,
                                      transcendentals=128,
                                      bytes_accessed=68_096),
    )
    # TODO(synk): for batch > 1 add a leading grid axis with
    # dimension_semantics=("parallel",) so both v7x TensorCores are used.


# ----------------------------------------------------------------------------
# JIT wrapper: only trivial layout plumbing (im2col of the 1-channel input,
# transpose of the tiny output).
# ----------------------------------------------------------------------------
@jax.jit
def model_forward(x_ncl, packed_params):
    # x_ncl: (N=1, C=1, L) PyTorch layout
    n, c_in, l0 = x_ncl.shape
    assert n == 1 and c_in == 1
    l1 = l0 // 2
    x = jnp.reshape(x_ncl, (l0,)).astype(jnp.float32)
    xp = jnp.concatenate([jnp.zeros((1,), jnp.float32), x])      # left zero pad
    # Layer-1 im2col: column k holds x[2j + k - 1]  ->  (L/2, 3)
    xcol = jnp.stack([xp[k:k + 2 * l1 - 1:2] for k in range(3)], axis=1)
    xcol = xcol.astype(jnp.bfloat16)

    out_t = _fused_pallas_call(l0)(xcol, packed_params)          # (8, 32)
    return jnp.transpose(out_t, (1, 0))[None]                    # (1, 32, 8)


# ----------------------------------------------------------------------------
# Deterministic parameters packed into ONE lane-dense (128, 128) f32 block
# (built once, outside jit).  Layout:
#   [0:96,  0:32 ] conv2 weights   (row k*32+ci, col co  ==  w[co, ci, k])
#   [0:96, 32:64 ] conv3 weights
#   [0:96, 64:96 ] conv4 weights
#   [0:3,  96:128] conv1 weights   (row k, col co  ==  w[co, 0, k])
#   [8:12, 96:128] BN gamma (one row per layer)
#   [16:20,96:128] BN beta
#   [24:32,96:128] Linear weight (8, 32)
#   [40:48,96:97 ] Linear bias   (8, 1)
# ----------------------------------------------------------------------------
def make_params(key):
    keys = jax.random.split(key, 6)
    conv_shapes = [(32, 1, 3), (32, 32, 3), (32, 32, 3), (32, 32, 3)]
    w_mats = []
    for i, (c_out, c_in, k) in enumerate(conv_shapes):
        scale = 1.0 / jnp.sqrt(jnp.float32(c_in * k))
        w_ock = jax.random.normal(keys[i], (c_out, c_in, k), jnp.float32) * scale
        w_mats.append(jnp.transpose(w_ock, (2, 1, 0)).reshape(k * c_in, c_out))
    gamma = jnp.ones((4, 32), jnp.float32)     # BN weight init (PyTorch default)
    beta = jnp.zeros((4, 32), jnp.float32)     # BN bias init
    lin_w = jax.random.normal(keys[4], (8, 32), jnp.float32) / jnp.sqrt(32.0)
    lin_b = jax.random.normal(keys[5], (8,), jnp.float32) * 0.01

    p = jnp.zeros((128, 128), jnp.float32)
    p = p.at[0:96, 0:32].set(w_mats[1])
    p = p.at[0:96, 32:64].set(w_mats[2])
    p = p.at[0:96, 64:96].set(w_mats[3])
    p = p.at[0:3, 96:128].set(w_mats[0])
    p = p.at[8:12, 96:128].set(gamma)
    p = p.at[16:20, 96:128].set(beta)
    p = p.at[24:32, 96:128].set(lin_w)
    p = p.at[40:48, 96:97].set(lin_b.reshape(8, 1))
    # TODO(synk): BatchNorm running-mean/var buffer updates (momentum=0.1) are
    # training-time state and are not modeled (they do not affect this forward).
    return {"packed": p}


if __name__ == "__main__":
    key = jax.random.PRNGKey(0)
    pkey, xkey = jax.random.split(key)
    params = make_params(pkey)
    # (N=1, C_in=1, L=512): 512 -> 256 -> 128 -> 64 -> 32 -> Linear(32, 8)
    x = jax.random.normal(xkey, (1, 1, 512), dtype=jnp.float32)
    out = jax.block_until_ready(model_forward(x, params["packed"]))
    assert out.shape == (1, 32, 8), out.shape
    assert bool(jnp.all(jnp.isfinite(out)))
    print("KERNEL_OK")
</pallas_src>

<mosaic_0001>
module attributes {stable_mosaic.version = 11 : i64} {
  func.func @_fused_forward_kernel(%arg0: memref<256x3xbf16, #tpu.memory_space<vmem>>, %arg1: memref<128x128xf32, #tpu.memory_space<vmem>>, %arg2: memref<8x32xf32, #tpu.memory_space<vmem>>, %arg3: memref<264x32xf32, #tpu.memory_space<vmem>>, %arg4: memref<136x32xf32, #tpu.memory_space<vmem>>, %arg5: memref<72x32xf32, #tpu.memory_space<vmem>>, %arg6: memref<128x96xf32, #tpu.memory_space<vmem>>) attributes {dimension_semantics = [], scalar_prefetch = 0 : i64, scratch_operands = 4 : i64, tpu.core_type = #tpu.core_type<tc>} {
    %c0 = arith.constant 0 : index
    %c96 = arith.constant 96 : index
    %0 = vector.load %arg1[%c0, %c96] : memref<128x128xf32, #tpu.memory_space<vmem>>, vector<3x32xf32>
    %1 = arith.truncf %0 : vector<3x32xf32> to vector<3x32xbf16>
    %c0_0 = arith.constant 0 : index
    %c0_1 = arith.constant 0 : index
    %2 = vector.load %arg1[%c0_0, %c0_1] : memref<128x128xf32, #tpu.memory_space<vmem>>, vector<96x32xf32>
    %3 = arith.truncf %2 : vector<96x32xf32> to vector<96x32xbf16>
    %c0_2 = arith.constant 0 : index
    %c32 = arith.constant 32 : index
    %4 = vector.load %arg1[%c0_2, %c32] : memref<128x128xf32, #tpu.memory_space<vmem>>, vector<96x32xf32>
    %5 = arith.truncf %4 : vector<96x32xf32> to vector<96x32xbf16>
    %c0_3 = arith.constant 0 : index
    %c64 = arith.constant 64 : index
    %6 = vector.load %arg1[%c0_3, %c64] : memref<128x128xf32, #tpu.memory_space<vmem>>, vector<96x32xf32>
    %7 = arith.truncf %6 : vector<96x32xf32> to vector<96x32xbf16>
    %c0_4 = arith.constant 0 : index
    %c0_5 = arith.constant 0 : index
    %8 = vector.load %arg0[%c0_4, %c0_5] : memref<256x3xbf16, #tpu.memory_space<vmem>>, vector<256x3xbf16>
    %cst = arith.constant dense<0.000000e+00> : vector<256x32xf32>
    %9 = tpu.matmul %8, %1, %cst {dimension_numbers = #tpu.dot_dimension_numbers<[1], [0], [0], [1], [0, 0, 1, 1], [], []>} : vector<256x3xbf16>, vector<3x32xbf16>, vector<256x32xf32> -> vector<256x32xf32>
    %cst_6 = arith.constant dense<0.000000e+00> : vector<32xf32>
    %10 = vector.multi_reduction <add>, %9, %cst_6 [0] : vector<256x32xf32> to vector<32xf32>
    %11 = vector.shape_cast %10 : vector<32xf32> to vector<1x32xf32>
    %cst_7 = arith.constant 3.906250e-03 : f32
    %12 = vector.broadcast %cst_7 : f32 to vector<1x32xf32>
    %13 = arith.mulf %11, %12 : vector<1x32xf32>
    %14 = arith.mulf %9, %9 : vector<256x32xf32>
    %cst_8 = arith.constant dense<0.000000e+00> : vector<32xf32>
    %15 = vector.multi_reduction <add>, %14, %cst_8 [0] : vector<256x32xf32> to vector<32xf32>
    %16 = vector.shape_cast %15 : vector<32xf32> to vector<1x32xf32>
    %cst_9 = arith.constant 3.906250e-03 : f32
    %17 = vector.broadcast %cst_9 : f32 to vector<1x32xf32>
    %18 = arith.mulf %16, %17 : vector<1x32xf32>
    %19 = arith.mulf %13, %13 : vector<1x32xf32>
    %20 = arith.subf %18, %19 : vector<1x32xf32>
    %c8 = arith.constant 8 : index
    %c96_10 = arith.constant 96 : index
    %21 = vector.load %arg1[%c8, %c96_10] : memref<128x128xf32, #tpu.memory_space<vmem>>, vector<1x32xf32>
    %c16 = arith.constant 16 : index
    %c96_11 = arith.constant 96 : index
    %22 = vector.load %arg1[%c16, %c96_11] : memref<128x128xf32, #tpu.memory_space<vmem>>, vector<1x32xf32>
    %cst_12 = arith.constant 9.99999974E-6 : f32
    %23 = vector.broadcast %cst_12 : f32 to vector<1x32xf32>
    %24 = arith.addf %20, %23 : vector<1x32xf32>
    %25 = math.rsqrt %24 : vector<1x32xf32>
    %26 = arith.mulf %21, %25 : vector<1x32xf32>
    %27 = arith.mulf %13, %26 : vector<1x32xf32>
    %28 = arith.subf %22, %27 : vector<1x32xf32>
    %29 = vector.broadcast %26 : vector<1x32xf32> to vector<256x32xf32>
    %30 = arith.mulf %9, %29 : vector<256x32xf32>
    %31 = vector.broadcast %28 : vector<1x32xf32> to vector<256x32xf32>
    %32 = arith.addf %30, %31 : vector<256x32xf32>
    %cst_13 = arith.constant 0.000000e+00 : f32
    %33 = vector.broadcast %cst_13 : f32 to vector<256x32xf32>
    %34 = arith.maximumf %32, %33 : vector<256x32xf32>
    %cst_14 = arith.constant 0.000000e+00 : f32
    %35 = vector.broadcast %cst_14 : f32 to vector<8x32xf32>
    %c0_15 = arith.constant 0 : index
    %c0_16 = arith.constant 0 : index
    %36 = vector.load %arg3[%c0_15, %c0_16] : memref<264x32xf32, #tpu.memory_space<vmem>>, vector<8x32xf32>
    tpu.vector_store %arg3[%c0_15, %c0_16], %35 {strides = array<i32>} : memref<264x32xf32, #tpu.memory_space<vmem>>, vector<8x32xf32>,
    %c8_17 = arith.constant 8 : index
    %c0_18 = arith.constant 0 : index
    %37 = vector.load %arg3[%c8_17, %c0_18] : memref<264x32xf32, #tpu.memory_space<vmem>>, vector<256x32xf32>
    tpu.vector_store %arg3[%c8_17, %c0_18], %34 {strides = array<i32>} : memref<264x32xf32, #tpu.memory_space<vmem>>, vector<256x32xf32>,
    %c7 = arith.constant 7 : index
    %c0_19 = arith.constant 0 : index
    %38 = tpu.strided_load %arg3[%c7, %c0_19] {strides = array<i32: 2, 1>} : memref<264x32xf32, #tpu.memory_space<vmem>>, vector<128x32xf32>
    %c0_20 = arith.constant 0 : index
    %c0_21 = arith.constant 0 : index
    %39 = vector.load %arg6[%c0_20, %c0_21] : memref<128x96xf32, #tpu.memory_space<vmem>>, vector<128x32xf32>
    tpu.vector_store %arg6[%c0_20, %c0_21], %38 {strides = array<i32>} : memref<128x96xf32, #tpu.memory_space<vmem>>, vector<128x32xf32>,
    %c8_22 = arith.constant 8 : index
    %c0_23 = arith.constant 0 : index
    %40 = tpu.strided_load %arg3[%c8_22, %c0_23] {strides = array<i32: 2, 1>} : memref<264x32xf32, #tpu.memory_space<vmem>>, vector<128x32xf32>
    %c0_24 = arith.constant 0 : index
    %c32_25 = arith.constant 32 : index
    %41 = vector.load %arg6[%c0_24, %c32_25] : memref<128x96xf32, #tpu.memory_space<vmem>>, vector<128x32xf32>
    tpu.vector_store %arg6[%c0_24, %c32_25], %40 {strides = array<i32>} : memref<128x96xf32, #tpu.memory_space<vmem>>, vector<128x32xf32>,
    %c9 = arith.constant 9 : index
    %c0_26 = arith.constant 0 : index
    %42 = tpu.strided_load %arg3[%c9, %c0_26] {strides = array<i32: 2, 1>} : memref<264x32xf32, #tpu.memory_space<vmem>>, vector<128x32xf32>
    %c0_27 = arith.constant 0 : index
    %c64_28 = arith.constant 64 : index
    %43 = vector.load %arg6[%c0_27, %c64_28] : memref<128x96xf32, #tpu.memory_space<vmem>>, vector<128x32xf32>
    tpu.vector_store %arg6[%c0_27, %c64_28], %42 {strides = array<i32>} : memref<128x96xf32, #tpu.memory_space<vmem>>, vector<128x32xf32>,
    %c0_29 = arith.constant 0 : index
    %c0_30 = arith.constant 0 : index
    %44 = vector.load %arg6[%c0_29, %c0_30] : memref<128x96xf32, #tpu.memory_space<vmem>>, vector<128x96xf32>
    %45 = arith.truncf %44 : vector<128x96xf32> to vector<128x96xbf16>
    %cst_31 = arith.constant dense<0.000000e+00> : vector<128x32xf32>
    %46 = tpu.matmul %45, %3, %cst_31 {dimension_numbers = #tpu.dot_dimension_numbers<[1], [0], [0], [1], [0, 0, 1, 1], [], []>} : vector<128x96xbf16>, vector<96x32xbf16>, vector<128x32xf32> -> vector<128x32xf32>
    %cst_32 = arith.constant dense<0.000000e+00> : vector<32xf32>
    %47 = vector.multi_reduction <add>, %46, %cst_32 [0] : vector<128x32xf32> to vector<32xf32>
    %48 = vector.shape_cast %47 : vector<32xf32> to vector<1x32xf32>
    %cst_33 = arith.constant 7.812500e-03 : f32
    %49 = vector.broadcast %cst_33 : f32 to vector<1x32xf32>
    %50 = arith.mulf %48, %49 : vector<1x32xf32>
    %51 = arith.mulf %46, %46 : vector<128x32xf32>
    %cst_34 = arith.constant dense<0.000000e+00> : vector<32xf32>
    %52 = vector.multi_reduction <add>, %51, %cst_34 [0] : vector<128x32xf32> to vector<32xf32>
    %53 = vector.shape_cast %52 : vector<32xf32> to vector<1x32xf32>
    %cst_35 = arith.constant 7.812500e-03 : f32
    %54 = vector.broadcast %cst_35 : f32 to vector<1x32xf32>
    %55 = arith.mulf %53, %54 : vector<1x32xf32>
    %56 = arith.mulf %50, %50 : vector<1x32xf32>
    %57 = arith.subf %55, %56 : vector<1x32xf32>
    %c9_36 = arith.constant 9 : index
    %c96_37 = arith.constant 96 : index
    %58 = vector.load %arg1[%c9_36, %c96_37] : memref<128x128xf32, #tpu.memory_space<vmem>>, vector<1x32xf32>
    %c17 = arith.constant 17 : index
    %c96_38 = arith.constant 96 : index
    %59 = vector.load %arg1[%c17, %c96_38] : memref<128x128xf32, #tpu.memory_space<vmem>>, vector<1x32xf32>
    %cst_39 = arith.constant 9.99999974E-6 : f32
    %60 = vector.broadcast %cst_39 : f32 to vector<1x32xf32>
    %61 = arith.addf %57, %60 : vector<1x32xf32>
    %62 = math.rsqrt %61 : vector<1x32xf32>
    %63 = arith.mulf %58, %62 : vector<1x32xf32>
    %64 = arith.mulf %50, %63 : vector<1x32xf32>
    %65 = arith.subf %59, %64 : vector<1x32xf32>
    %66 = vector.broadcast %63 : vector<1x32xf32> to vector<128x32xf32>
    %67 = arith.mulf %46, %66 : vector<128x32xf32>
    %68 = vector.broadcast %65 : vector<1x32xf32> to vector<128x32xf32>
    %69 = arith.addf %67, %68 : vector<128x32xf32>
    %cst_40 = arith.constant 0.000000e+00 : f32
    %70 = vector.broadcast %cst_40 : f32 to vector<128x32xf32>
    %71 = arith.maximumf %69, %70 : vector<128x32xf32>
    %cst_41 = arith.constant 0.000000e+00 : f32
    %72 = vector.broadcast %cst_41 : f32 to vector<8x32xf32>
    %c0_42 = arith.constant 0 : index
    %c0_43 = arith.constant 0 : index
    %73 = vector.load %arg4[%c0_42, %c0_43] : memref<136x32xf32, #tpu.memory_space<vmem>>, vector<8x32xf32>
    tpu.vector_store %arg4[%c0_42, %c0_43], %72 {strides = array<i32>} : memref<136x32xf32, #tpu.memory_space<vmem>>, vector<8x32xf32>,
    %c8_44 = arith.constant 8 : index
    %c0_45 = arith.constant 0 : index
    %74 = vector.load %arg4[%c8_44, %c0_45] : memref<136x32xf32, #tpu.memory_space<vmem>>, vector<128x32xf32>
    tpu.vector_store %arg4[%c8_44, %c0_45], %71 {strides = array<i32>} : memref<136x32xf32, #tpu.memory_space<vmem>>, vector<128x32xf32>,
    %c7_46 = arith.constant 7 : index
    %c0_47 = arith.constant 0 : index
    %75 = tpu.strided_load %arg4[%c7_46, %c0_47] {strides = array<i32: 2, 1>} : memref<136x32xf32, #tpu.memory_space<vmem>>, vector<64x32xf32>
    %c0_48 = arith.constant 0 : index
    %c0_49 = arith.constant 0 : index
    %76 = vector.load %arg6[%c0_48, %c0_49] : memref<128x96xf32, #tpu.memory_space<vmem>>, vector<64x32xf32>
    tpu.vector_store %arg6[%c0_48, %c0_49], %75 {strides = array<i32>} : memref<128x96xf32, #tpu.memory_space<vmem>>, vector<64x32xf32>,
    %c8_50 = arith.constant 8 : index
    %c0_51 = arith.constant 0 : index
    %77 = tpu.strided_load %arg4[%c8_50, %c0_51] {strides = array<i32: 2, 1>} : memref<136x32xf32, #tpu.memory_space<vmem>>, vector<64x32xf32>
    %c0_52 = arith.constant 0 : index
    %c32_53 = arith.constant 32 : index
    %78 = vector.load %arg6[%c0_52, %c32_53] : memref<128x96xf32, #tpu.memory_space<vmem>>, vector<64x32xf32>
    tpu.vector_store %arg6[%c0_52, %c32_53], %77 {strides = array<i32>} : memref<128x96xf32, #tpu.memory_space<vmem>>, vector<64x32xf32>,
    %c9_54 = arith.constant 9 : index
    %c0_55 = arith.constant 0 : index
    %79 = tpu.strided_load %arg4[%c9_54, %c0_55] {strides = array<i32: 2, 1>} : memref<136x32xf32, #tpu.memory_space<vmem>>, vector<64x32xf32>
    %c0_56 = arith.constant 0 : index
    %c64_57 = arith.constant 64 : index
    %80 = vector.load %arg6[%c0_56, %c64_57] : memref<128x96xf32, #tpu.memory_space<vmem>>, vector<64x32xf32>
    tpu.vector_store %arg6[%c0_56, %c64_57], %79 {strides = array<i32>} : memref<128x96xf32, #tpu.memory_space<vmem>>, vector<64x32xf32>,
    %c0_58 = arith.constant 0 : index
    %c0_59 = arith.constant 0 : index
    %81 = vector.load %arg6[%c0_58, %c0_59] : memref<128x96xf32, #tpu.memory_space<vmem>>, vector<64x96xf32>
    %82 = arith.truncf %81 : vector<64x96xf32> to vector<64x96xbf16>
    %cst_60 = arith.constant dense<0.000000e+00> : vector<64x32xf32>
    %83 = tpu.matmul %82, %5, %cst_60 {dimension_numbers = #tpu.dot_dimension_numbers<[1], [0], [0], [1], [0, 0, 1, 1], [], []>} : vector<64x96xbf16>, vector<96x32xbf16>, vector<64x32xf32> -> vector<64x32xf32>
    %cst_61 = arith.constant dense<0.000000e+00> : vector<32xf32>
    %84 = vector.multi_reduction <add>, %83, %cst_61 [0] : vector<64x32xf32> to vector<32xf32>
    %85 = vector.shape_cast %84 : vector<32xf32> to vector<1x32xf32>
    %cst_62 = arith.constant 1.562500e-02 : f32
    %86 = vector.broadcast %cst_62 : f32 to vector<1x32xf32>
    %87 = arith.mulf %85, %86 : vector<1x32xf32>
    %88 = arith.mulf %83, %83 : vector<64x32xf32>
    %cst_63 = arith.constant dense<0.000000e+00> : vector<32xf32>
    %89 = vector.multi_reduction <add>, %88, %cst_63 [0] : vector<64x32xf32> to vector<32xf32>
    %90 = vector.shape_cast %89 : vector<32xf32> to vector<1x32xf32>
    %cst_64 = arith.constant 1.562500e-02 : f32
    %91 = vector.broadcast %cst_64 : f32 to vector<1x32xf32>
    %92 = arith.mulf %90, %91 : vector<1x32xf32>
    %93 = arith.mulf %87, %87 : vector<1x32xf32>
    %94 = arith.subf %92, %93 : vector<1x32xf32>
    %c10 = arith.constant 10 : index
    %c96_65 = arith.constant 96 : index
    %95 = vector.load %arg1[%c10, %c96_65] : memref<128x128xf32, #tpu.memory_space<vmem>>, vector<1x32xf32>
    %c18 = arith.constant 18 : index
    %c96_66 = arith.constant 96 : index
    %96 = vector.load %arg1[%c18, %c96_66] : memref<128x128xf32, #tpu.memory_space<vmem>>, vector<1x32xf32>
    %cst_67 = arith.constant 9.99999974E-6 : f32
    %97 = vector.broadcast %cst_67 : f32 to vector<1x32xf32>
    %98 = arith.addf %94, %97 : vector<1x32xf32>
    %99 = math.rsqrt %98 : vector<1x32xf32>
    %100 = arith.mulf %95, %99 : vector<1x32xf32>
    %101 = arith.mulf %87, %100 : vector<1x32xf32>
    %102 = arith.subf %96, %101 : vector<1x32xf32>
    %103 = vector.broadcast %100 : vector<1x32xf32> to vector<64x32xf32>
    %104 = arith.mulf %83, %103 : vector<64x32xf32>
    %105 = vector.broadcast %102 : vector<1x32xf32> to vector<64x32xf32>
    %106 = arith.addf %104, %105 : vector<64x32xf32>
    %cst_68 = arith.constant 0.000000e+00 : f32
    %107 = vector.broadcast %cst_68 : f32 to vector<64x32xf32>
    %108 = arith.maximumf %106, %107 : vector<64x32xf32>
    %cst_69 = arith.constant 0.000000e+00 : f32
    %109 = vector.broadcast %cst_69 : f32 to vector<8x32xf32>
    %c0_70 = arith.constant 0 : index
    %c0_71 = arith.constant 0 : index
    %110 = vector.load %arg5[%c0_70, %c0_71] : memref<72x32xf32, #tpu.memory_space<vmem>>, vector<8x32xf32>
    tpu.vector_store %arg5[%c0_70, %c0_71], %109 {strides = array<i32>} : memref<72x32xf32, #tpu.memory_space<vmem>>, vector<8x32xf32>,
    %c8_72 = arith.constant 8 : index
    %c0_73 = arith.constant 0 : index
    %111 = vector.load %arg5[%c8_72, %c0_73] : memref<72x32xf32, #tpu.memory_space<vmem>>, vector<64x32xf32>
    tpu.vector_store %arg5[%c8_72, %c0_73], %108 {strides = array<i32>} : memref<72x32xf32, #tpu.memory_space<vmem>>, vector<64x32xf32>,
    %c7_74 = arith.constant 7 : index
    %c0_75 = arith.constant 0 : index
    %112 = tpu.strided_load %arg5[%c7_74, %c0_75] {strides = array<i32: 2, 1>} : memref<72x32xf32, #tpu.memory_space<vmem>>, vector<32x32xf32>
    %c0_76 = arith.constant 0 : index
    %c0_77 = arith.constant 0 : index
    %113 = vector.load %arg6[%c0_76, %c0_77] : memref<128x96xf32, #tpu.memory_space<vmem>>, vector<32x32xf32>
    tpu.vector_store %arg6[%c0_76, %c0_77], %112 {strides = array<i32>} : memref<128x96xf32, #tpu.memory_space<vmem>>, vector<32x32xf32>,
    %c8_78 = arith.constant 8 : index
    %c0_79 = arith.constant 0 : index
    %114 = tpu.strided_load %arg5[%c8_78, %c0_79] {strides = array<i32: 2, 1>} : memref<72x32xf32, #tpu.memory_space<vmem>>, vector<32x32xf32>
    %c0_80 = arith.constant 0 : index
    %c32_81 = arith.constant 32 : index
    %115 = vector.load %arg6[%c0_80, %c32_81] : memref<128x96xf32, #tpu.memory_space<vmem>>, vector<32x32xf32>
    tpu.vector_store %arg6[%c0_80, %c32_81], %114 {strides = array<i32>} : memref<128x96xf32, #tpu.memory_space<vmem>>, vector<32x32xf32>,
    %c9_82 = arith.constant 9 : index
    %c0_83 = arith.constant 0 : index
    %116 = tpu.strided_load %arg5[%c9_82, %c0_83] {strides = array<i32: 2, 1>} : memref<72x32xf32, #tpu.memory_space<vmem>>, vector<32x32xf32>
    %c0_84 = arith.constant 0 : index
    %c64_85 = arith.constant 64 : index
    %117 = vector.load %arg6[%c0_84, %c64_85] : memref<128x96xf32, #tpu.memory_space<vmem>>, vector<32x32xf32>
    tpu.vector_store %arg6[%c0_84, %c64_85], %116 {strides = array<i32>} : memref<128x96xf32, #tpu.memory_space<vmem>>, vector<32x32xf32>,
    %c0_86 = arith.constant 0 : index
    %c0_87 = arith.constant 0 : index
    %118 = vector.load %arg6[%c0_86, %c0_87] : memref<128x96xf32, #tpu.memory_space<vmem>>, vector<32x96xf32>
    %119 = arith.truncf %118 : vector<32x96xf32> to vector<32x96xbf16>
    %cst_88 = arith.constant dense<0.000000e+00> : vector<32x32xf32>
    %120 = tpu.matmul %119, %7, %cst_88 {dimension_numbers = #tpu.dot_dimension_numbers<[1], [0], [0], [1], [0, 0, 1, 1], [], []>} : vector<32x96xbf16>, vector<96x32xbf16>, vector<32x32xf32> -> vector<32x32xf32>
    %cst_89 = arith.constant dense<0.000000e+00> : vector<32xf32>
    %121 = vector.multi_reduction <add>, %120, %cst_89 [0] : vector<32x32xf32> to vector<32xf32>
    %122 = vector.shape_cast %121 : vector<32xf32> to vector<1x32xf32>
    %cst_90 = arith.constant 3.125000e-02 : f32
    %123 = vector.broadcast %cst_90 : f32 to vector<1x32xf32>
    %124 = arith.mulf %122, %123 : vector<1x32xf32>
    %125 = arith.mulf %120, %120 : vector<32x32xf32>
    %cst_91 = arith.constant dense<0.000000e+00> : vector<32xf32>
    %126 = vector.multi_reduction <add>, %125, %cst_91 [0] : vector<32x32xf32> to vector<32xf32>
    %127 = vector.shape_cast %126 : vector<32xf32> to vector<1x32xf32>
    %cst_92 = arith.constant 3.125000e-02 : f32
    %128 = vector.broadcast %cst_92 : f32 to vector<1x32xf32>
    %129 = arith.mulf %127, %128 : vector<1x32xf32>
    %130 = arith.mulf %124, %124 : vector<1x32xf32>
    %131 = arith.subf %129, %130 : vector<1x32xf32>
    %c11 = arith.constant 11 : index
    %c96_93 = arith.constant 96 : index
    %132 = vector.load %arg1[%c11, %c96_93] : memref<128x128xf32, #tpu.memory_space<vmem>>, vector<1x32xf32>
    %c19 = arith.constant 19 : index
    %c96_94 = arith.constant 96 : index
    %133 = vector.load %arg1[%c19, %c96_94] : memref<128x128xf32, #tpu.memory_space<vmem>>, vector<1x32xf32>
    %cst_95 = arith.constant 9.99999974E-6 : f32
    %134 = vector.broadcast %cst_95 : f32 to vector<1x32xf32>
    %135 = arith.addf %131, %134 : vector<1x32xf32>
    %136 = math.rsqrt %135 : vector<1x32xf32>
    %137 = arith.mulf %132, %136 : vector<1x32xf32>
    %138 = arith.mulf %124, %137 : vector<1x32xf32>
    %139 = arith.subf %133, %138 : vector<1x32xf32>
    %140 = vector.broadcast %137 : vector<1x32xf32> to vector<32x32xf32>
    %141 = arith.mulf %120, %140 : vector<32x32xf32>
    %142 = vector.broadcast %139 : vector<1x32xf32> to vector<32x32xf32>
    %143 = arith.addf %141, %142 : vector<32x32xf32>
    %cst_96 = arith.constant 0.000000e+00 : f32
    %144 = vector.broadcast %cst_96 : f32 to vector<32x32xf32>
    %145 = arith.maximumf %143, %144 : vector<32x32xf32>
    %c24 = arith.constant 24 : index
    %c96_97 = arith.constant 96 : index
    %146 = vector.load %arg1[%c24, %c96_97] : memref<128x128xf32, #tpu.memory_space<vmem>>, vector<8x32xf32>
    %c40 = arith.constant 40 : index
    %c96_98 = arith.constant 96 : index
    %147 = vector.load %arg1[%c40, %c96_98] : memref<128x128xf32, #tpu.memory_space<vmem>>, vector<8x1xf32>
    %cst_99 = arith.constant dense<0.000000e+00> : vector<8x32xf32>
    %148 = tpu.matmul %146, %145, %cst_99 {dimension_numbers = #tpu.dot_dimension_numbers<[1], [0], [0], [1], [0, 0, 1, 1], [], []>} : vector<8x32xf32>, vector<32x32xf32>, vector<8x32xf32> -> vector<8x32xf32>
    %149 = vector.broadcast %147 : vector<8x1xf32> to vector<8x32xf32>
    %150 = arith.addf %148, %149 : vector<8x32xf32>
    %c0_100 = arith.constant 0 : index
    %c0_101 = arith.constant 0 : index
    %151 = vector.load %arg2[%c0_100, %c0_101] : memref<8x32xf32, #tpu.memory_space<vmem>>, vector<8x32xf32>
    tpu.vector_store %arg2[%c0_100, %c0_101], %150 {strides = array<i32>} : memref<8x32xf32, #tpu.memory_space<vmem>>, vector<8x32xf32>,
    return
  }
}

</mosaic_0001>

<bundles_post_ra>
// kernel: model_forward.1
= control target key start
LH: loop header
LB: loop body
LE: loop exit
PB: predicated region body
PF: predicated region fallthrough
CT: control target
= control target key end

     0   :  { %vm148_vm0 = vcmask 23552   ;;  %s2288_s13 = smov 32   ;;  %s3306_s0 = inlined_call_operand.vmem [shape: bf16[256,3], index: 0, kind: input, shape index: {}]   ;;  %s3307_s1 = inlined_call_operand.vmem [shape: f32[128,128], index: 1, kind: input, shape index: {}]   ;;  %s3308_s2 = inlined_call_operand.hbm [shape: f32[8,32], index: 2, kind: output, shape index: {}]  }
   0x1   :  { %v13_v0 = vld [vmem:[%s3307_s1] sm:$0x7] }
   0x2   :  { %v14_v1 = vpack.c.bf16 %v13_v0, %v13_v0  ;;  %v2240_v2 = vld [vmem:[%s3306_s0] sm:$0xff]  }
   0x3   :  { %2117 = vmatprep.mubr.msk.bf16.mxu0 %vm148_vm0, %v2240_v2 }
   0x4   :  { %146 = vrot.lane.b32.xlu0 %v14_v1, %s2288_s13 }
   0x5   :  { %7 = vsyncpa [#allocation7], 0  ;;  %vm197_vm1 = vcmask 1040384   ;;  %vm198_vm2 = vcmask 1041408   ;;  %v2289_v3 = vmov 65535   ;;  %v2241_v8 = vld [vmem:[%s3306_s0 + $0x8] sm:$0xff]  }
   0x6   :  { %v199_v4 = vsel %vm197_vm1, 4294967295, %v2289_v3  ;;  %v2242_v9 = vld [vmem:[%s3306_s0 + $0x10] sm:$0xff]   ;;  %v2243_v10 = vld [vmem:[%s3306_s0 + $0x18] sm:$0xff]   ;;  %v2244_v11 = vld [vmem:[%s3306_s0 + $0x20] sm:$0xff]   ;;  %vm365_vm3 = vcmask 261120   ;;  %s2292_s9 = smov 64  }
   0x7   :  { %v200_v5 = vsel %vm198_vm2, %v199_v4, 0  ;;  %v2245_v12 = vld [vmem:[%s3306_s0 + $0x28] sm:$0xff]   ;;  %v2246_v13 = vld [vmem:[%s3306_s0 + $0x30] sm:$0xff]   ;;  %v2247_v14 = vld [vmem:[%s3306_s0 + $0x38] sm:$0xff]   ;;  %vm848_vm4 = vcmask 523520   ;;  %vm961_vm5 = vcmask 785920  }
   0x8   :  { %v2248_v15 = vld [vmem:[%s3306_s0 + $0x40] sm:$0xff]   ;;  %v2249_v16 = vld [vmem:[%s3306_s0 + $0x48] sm:$0xff]   ;;  %v2250_v17 = vld [vmem:[%s3306_s0 + $0x50] sm:$0xff]   ;;  %vm1002_vm6 = vcmask 785408   ;;  %vm2294_vm7 = vmmov 0  }
   0x9   :  { %v2251_v18 = vld [vmem:[%s3306_s0 + $0x58] sm:$0xff]   ;;  %v2252_v19 = vld [vmem:[%s3306_s0 + $0x60] sm:$0xff]   ;;  %v2253_v20 = vld [vmem:[%s3306_s0 + $0x68] sm:$0xff]  }
   0xa   :  { %v2254_v21 = vld [vmem:[%s3306_s0 + $0x70] sm:$0xff]   ;;  %v2255_v22 = vld [vmem:[%s3306_s0 + $0x78] sm:$0xff]   ;;  %s2290_s0 = smov 96  }
  0x76   :  { %v147_v6 = vpop.permute.xlu0 %146 }
  0x77   :  { %v202_v7 = vand.u32 %v200_v5, %v147_v6 }
  0x79   :  { %2115 = vmatprep.subr.bf16.mxu0 %v202_v7 }
  0x7a   :  { %2116 = vmatpush3.bf16.msra.mxu0 %v202_v7 }
  0x7d   :  { %2118 = vmatmul.mubr.msk.bf16.vlgmr.msra.gmra.mrb[0].mxu0 %vm148_vm0, %v2241_v8 }
  0x7e   :  { %2121 = vmatprep.mubr.msk.bf16.mxu0 %vm148_vm0, %v2242_v9 }
  0x85   :  { %2122 = vmatmul.mubr.msk.bf16.gmra.mrb[4].mxu0 %vm148_vm0, %v2243_v10 }
  0x86   :  { %2125 = vmatprep.mubr.msk.bf16.mxu0 %vm148_vm0, %v2244_v11 }
  0x8d   :  { %2126 = vmatmul.mubr.msk.bf16.gmra.mrb[8].mxu0 %vm148_vm0, %v2245_v12 }
  0x8e   :  { %2129 = vmatprep.mubr.msk.bf16.mxu0 %vm148_vm0, %v2246_v13 }
  0x95   :  { %2130 = vmatmul.mubr.msk.bf16.gmra.mrb[12].mxu0 %vm148_vm0, %v2247_v14 }
  0x96   :  { %2133 = vmatprep.mubr.msk.bf16.mxu0 %vm148_vm0, %v2248_v15 }
  0x9d   :  { %2134 = vmatmul.mubr.msk.bf16.gmra.mrb[16].mxu0 %vm148_vm0, %v2249_v16 }
  0x9e   :  { %2137 = vmatprep.mubr.msk.bf16.mxu0 %vm148_vm0, %v2250_v17 }
  0xa5   :  { %2138 = vmatmul.mubr.msk.bf16.gmra.mrb[20].mxu0 %vm148_vm0, %v2251_v18 }
  0xa6   :  { %2141 = vmatprep.mubr.msk.bf16.mxu0 %vm148_vm0, %v2252_v19 }
  0xad   :  { %2142 = vmatmul.mubr.msk.bf16.gmra.mrb[24].mxu0 %vm148_vm0, %v2253_v20 }
  0xae   :  { %2145 = vmatprep.mubr.msk.bf16.mxu0 %vm148_vm0, %v2254_v21 }
  0xb5   :  { %2146 = vmatmul.mubr.msk.bf16.gmra.mrb[28].mxu0 %vm148_vm0, %v2255_v22 }
 0x150   :  { %v2380_v23 = vpop.f32.mrb[0].mxu0 }
 0x151   :  { %v2382_v24 = vpop.f32.mrb[1].mxu0  ;;  %v438_v28 = vmul.f32 %v2380_v23, %v2380_v23  ;;  %v369_v33 = vsel %vm365_vm3, %v2380_v23, 0.0 }
 0x152   :  { %v436_v25 = vmul.f32 %v2382_v24, %v2382_v24  ;;  %v2386_v26 = vpop.f32.mrb[2].mxu0  ;;  %v366_v29 = vsel %vm365_vm3, %v2382_v24, 0.0 }
 0x153   :  { %v2388_v27 = vpop.f32.mrb[3].mxu0  ;;  %v439_v35 = vmul.f32 %v2386_v26, %v2386_v26  ;;  %v471_v39 = vsel %vm365_vm3, %v438_v28, 0.0  ;;  %v371_v40 = vsel %vm365_vm3, %v2386_v26, 0.0 }
 0x154   :  { %v367_v30 = vsel %vm365_vm3, %v2388_v27, 0.0  ;;  %v437_v31 = vmul.f32 %v2388_v27, %v2388_v27  ;;  %v468_v34 = vsel %vm365_vm3, %v436_v25, 0.0 }
 0x155   :  { %v368_v32 = vadd.f32 %v367_v30, %v366_v29  ;;  %v473_v45 = vsel %vm365_vm3, %v439_v35, 0.0 }
 0x156   :  { %v469_v36 = vsel %vm365_vm3, %v437_v31, 0.0 }
 0x157   :  { %v370_v37 = vadd.f32 %v369_v33, %v368_v32  ;;  %v470_v38 = vadd.f32 %v469_v36, %v468_v34 }
 0x158   :  { %v2407_v41 = vpop.f32.mrb[4].mxu0 }
 0x159   :  { %v472_v42 = vadd.f32 %v471_v39, %v470_v38  ;;  %v2409_v43 = vpop.f32.mrb[5].mxu0  ;;  %v372_v44 = vadd.f32 %v371_v40, %v370_v37  ;;  %v442_v52 = vmul.f32 %v2407_v41, %v2407_v41  ;;  %v377_v58 = vsel %vm365_vm3, %v2407_v41, 0.0 }
 0x15a   :  { %v373_v46 = vsel %vm365_vm3, %v2409_v43, 0.0  ;;  %v440_v47 = vmul.f32 %v2409_v43, %v2409_v43  ;;  %v2416_v48 = vpop.f32.mrb[6].mxu0 }
 0x15b   :  { %v374_v49 = vadd.f32 %v373_v46, %v372_v44  ;;  %v474_v50 = vadd.f32 %v473_v45, %v472_v42  ;;  %v2418_v51 = vpop.f32.mrb[7].mxu0  ;;  %v443_v59 = vmul.f32 %v2416_v48, %v2416_v48  ;;  %v479_v63 = vsel %vm365_vm3, %v442_v52, 0.0 }
 0x15c   :  { %v475_v53 = vsel %vm365_vm3, %v440_v47, 0.0  ;;  %v375_v54 = vsel %vm365_vm3, %v2418_v51, 0.0  ;;  %v441_v55 = vmul.f32 %v2418_v51, %v2418_v51  ;;  %v379_v0 = vsel %vm365_vm3, %v2416_v48, 0.0 }
 0x15d   :  { %v476_v56 = vadd.f32 %v475_v53, %v474_v50  ;;  %v376_v57 = vadd.f32 %v375_v54, %v374_v49  ;;  %v481_v5 = vsel %vm365_vm3, %v443_v59, 0.0 }
 0x15e   :  { %v477_v60 = vsel %vm365_vm3, %v441_v55, 0.0 }
 0x15f   :  { %v378_v61 = vadd.f32 %v377_v58, %v376_v57  ;;  %v478_v62 = vadd.f32 %v477_v60, %v476_v56 }
 0x160   :  { %v2435_v1 = vpop.f32.mrb[8].mxu0 }
 0x161   :  { %v480_v2 = vadd.f32 %v479_v63, %v478_v62  ;;  %v2437_v3 = vpop.f32.mrb[9].mxu0  ;;  %v380_v4 = vadd.f32 %v379_v0, %v378_v61  ;;  %v446_v12 = vmul.f32 %v2435_v1, %v2435_v1  ;;  %v385_v18 = vsel %vm365_vm3, %v2435_v1, 0.0 }
 0x162   :  { %v381_v6 = vsel %vm365_vm3, %v2437_v3, 0.0  ;;  %v444_v7 = vmul.f32 %v2437_v3, %v2437_v3  ;;  %v2444_v8 = vpop.f32.mrb[10].mxu0 }
 0x163   :  { %v382_v9 = vadd.f32 %v381_v6, %v380_v4  ;;  %v482_v10 = vadd.f32 %v481_v5, %v480_v2  ;;  %v2446_v11 = vpop.f32.mrb[11].mxu0  ;;  %v447_v19 = vmul.f32 %v2444_v8, %v2444_v8  ;;  %v487_v25 = vsel %vm365_vm3, %v446_v12, 0.0 }
 0x164   :  { %v483_v13 = vsel %vm365_vm3, %v444_v7, 0.0  ;;  %v383_v14 = vsel %vm365_vm3, %v2446_v11, 0.0  ;;  %v445_v15 = vmul.f32 %v2446_v11, %v2446_v11  ;;  %v387_v28 = vsel %vm365_vm3, %v2444_v8, 0.0 }
 0x165   :  { %v484_v16 = vadd.f32 %v483_v13, %v482_v10  ;;  %v384_v17 = vadd.f32 %v383_v14, %v382_v9  ;;  %v489_v33 = vsel %vm365_vm3, %v447_v19, 0.0 }
 0x166   :  { %v485_v20 = vsel %vm365_vm3, %v445_v15, 0.0 }
 0x167   :  { %v386_v21 = vadd.f32 %v385_v18, %v384_v17  ;;  %v486_v22 = vadd.f32 %v485_v20, %v484_v16 }
 0x168   :  { %v2463_v29 = vpop.f32.mrb[12].mxu0 }
 0x169   :  { %v488_v30 = vadd.f32 %v487_v25, %v486_v22  ;;  %v2465_v31 = vpop.f32.mrb[13].mxu0  ;;  %v388_v32 = vadd.f32 %v387_v28, %v386_v21  ;;  %v450_v40 = vmul.f32 %v2463_v29, %v2463_v29  ;;  %v393_v49 = vsel %vm365_vm3, %v2463_v29, 0.0 }
 0x16a   :  { %v389_v34 = vsel %vm365_vm3, %v2465_v31, 0.0  ;;  %v448_v35 = vmul.f32 %v2465_v31, %v2465_v31  ;;  %v2472_v36 = vpop.f32.mrb[14].mxu0 }
 0x16b   :  { %v390_v37 = vadd.f32 %v389_v34, %v388_v32  ;;  %v490_v38 = vadd.f32 %v489_v33, %v488_v30  ;;  %v2474_v39 = vpop.f32.mrb[15].mxu0  ;;  %v451_v50 = vmul.f32 %v2472_v36, %v2472_v36  ;;  %v495_v55 = vsel %vm365_vm3, %v450_v40, 0.0 }
 0x16c   :  { %v491_v42 = vsel %vm365_vm3, %v448_v35, 0.0  ;;  %v391_v44 = vsel %vm365_vm3, %v2474_v39, 0.0  ;;  %v449_v45 = vmul.f32 %v2474_v39, %v2474_v39  ;;  %v395_v56 = vsel %vm365_vm3, %v2472_v36, 0.0 }
 0x16d   :  { %v492_v46 = vadd.f32 %v491_v42, %v490_v38  ;;  %v392_v47 = vadd.f32 %v391_v44, %v390_v37  ;;  %v497_v61 = vsel %vm365_vm3, %v451_v50, 0.0 }
 0x16e   :  { %v493_v52 = vsel %vm365_vm3, %v449_v45, 0.0 }
 0x16f   :  { %v394_v53 = vadd.f32 %v393_v49, %v392_v47  ;;  %v494_v54 = vadd.f32 %v493_v52, %v492_v46 }
 0x170   :  { %v2491_v57 = vpop.f32.mrb[16].mxu0 }
 0x171   :  { %v496_v58 = vadd.f32 %v495_v55, %v494_v54  ;;  %v2493_v59 = vpop.f32.mrb[17].mxu0  ;;  %v396_v60 = vadd.f32 %v395_v56, %v394_v53  ;;  %v454_v6 = vmul.f32 %v2491_v57, %v2491_v57  ;;  %v401_v14 = vsel %vm365_vm3, %v2491_v57, 0.0 }
 0x172   :  { %v397_v62 = vsel %vm365_vm3, %v2493_v59, 0.0  ;;  %v452_v63 = vmul.f32 %v2493_v59, %v2493_v59  ;;  %v2500_v0 = vpop.f32.mrb[18].mxu0 }
 0x173   :  { %v398_v2 = vadd.f32 %v397_v62, %v396_v60  ;;  %v498_v4 = vadd.f32 %v497_v61, %v496_v58  ;;  %v2502_v5 = vpop.f32.mrb[19].mxu0  ;;  %v455_v15 = vmul.f32 %v2500_v0, %v2500_v0  ;;  %v503_v19 = vsel %vm365_vm3, %v454_v6, 0.0 }
 0x174   :  { %v499_v7 = vsel %vm365_vm3, %v452_v63, 0.0  ;;  %v399_v9 = vsel %vm365_vm3, %v2502_v5, 0.0  ;;  %v453_v10 = vmul.f32 %v2502_v5, %v2502_v5  ;;  %v403_v20 = vsel %vm365_vm3, %v2500_v0, 0.0 }
 0x175   :  { %v500_v12 = vadd.f32 %v499_v7, %v498_v4  ;;  %v400_v13 = vadd.f32 %v399_v9, %v398_v2  ;;  %v505_v30 = vsel %vm365_vm3, %v455_v15, 0.0 }
 0x176   :  { %v501_v16 = vsel %vm365_vm3, %v453_v10, 0.0 }
 0x177   :  { %v402_v17 = vadd.f32 %v401_v14, %v400_v13  ;;  %v502_v18 = vadd.f32 %v501_v16, %v500_v12 }
 0x178   :  { %v2519_v21 = vpop.f32.mrb[20].mxu0 }
 0x179   :  { %v504_v22 = vadd.f32 %v503_v19, %v502_v18  ;;  %v2521_v25 = vpop.f32.mrb[21].mxu0  ;;  %v404_v28 = vadd.f32 %v403_v20, %v402_v17  ;;  %v458_v40 = vmul.f32 %v2519_v21, %v2519_v21  ;;  %v409_v49 = vsel %vm365_vm3, %v2519_v21, 0.0 }
 0x17a   :  { %v405_v32 = vsel %vm365_vm3, %v2521_v25, 0.0  ;;  %v456_v33 = vmul.f32 %v2521_v25, %v2521_v25  ;;  %v2528_v34 = vpop.f32.mrb[22].mxu0 }
 0x17b   :  { %v406_v35 = vadd.f32 %v405_v32, %v404_v28  ;;  %v506_v37 = vadd.f32 %v505_v30, %v504_v22  ;;  %v2530_v38 = vpop.f32.mrb[23].mxu0  ;;  %v459_v50 = vmul.f32 %v2528_v34, %v2528_v34  ;;  %v511_v55 = vsel %vm365_vm3, %v458_v40, 0.0 }
 0x17c   :  { %v507_v42 = vsel %vm365_vm3, %v456_v33, 0.0  ;;  %v407_v44 = vsel %vm365_vm3, %v2530_v38, 0.0  ;;  %v457_v45 = vmul.f32 %v2530_v38, %v2530_v38  ;;  %v411_v56 = vsel %vm365_vm3, %v2528_v34, 0.0 }
 0x17d   :  { %v508_v46 = vadd.f32 %v507_v42, %v506_v37  ;;  %v408_v47 = vadd.f32 %v407_v44, %v406_v35  ;;  %v513_v63 = vsel %vm365_vm3, %v459_v50, 0.0 }
 0x17e   :  { %v509_v52 = vsel %vm365_vm3, %v457_v45, 0.0 }
 0x17f   :  { %v410_v53 = vadd.f32 %v409_v49, %v408_v47  ;;  %v510_v54 = vadd.f32 %v509_v52, %v508_v46 }
 0x180   :  { %v2547_v58 = vpop.f32.mrb[24].mxu0 }
 0x181   :  { %v512_v60 = vadd.f32 %v511_v55, %v510_v54  ;;  %v2549_v61 = vpop.f32.mrb[25].mxu0  ;;  %v412_v62 = vadd.f32 %v411_v56, %v410_v53  ;;  %v462_v12 = vmul.f32 %v2547_v58, %v2547_v58  ;;  %v417_v18 = vsel %vm365_vm3, %v2547_v58, 0.0 }
 0x182   :  { %v413_v2 = vsel %vm365_vm3, %v2549_v61, 0.0  ;;  %v460_v4 = vmul.f32 %v2549_v61, %v2549_v61  ;;  %v2556_v6 = vpop.f32.mrb[26].mxu0 }
 0x183   :  { %v414_v7 = vadd.f32 %v413_v2, %v412_v62  ;;  %v514_v9 = vadd.f32 %v513_v63, %v512_v60  ;;  %v2558_v10 = vpop.f32.mrb[27].mxu0  ;;  %v463_v19 = vmul.f32 %v2556_v6, %v2556_v6  ;;  %v519_v30 = vsel %vm365_vm3, %v462_v12, 0.0 }
 0x184   :  { %v515_v13 = vsel %vm365_vm3, %v460_v4, 0.0  ;;  %v415_v14 = vsel %vm365_vm3, %v2558_v10, 0.0  ;;  %v461_v15 = vmul.f32 %v2558_v10, %v2558_v10  ;;  %v419_v32 = vsel %vm365_vm3, %v2556_v6, 0.0 }
 0x185   :  { %v516_v16 = vadd.f32 %v515_v13, %v514_v9  ;;  %v416_v17 = vadd.f32 %v415_v14, %v414_v7  ;;  %v521_v42 = vsel %vm365_vm3, %v463_v19, 0.0 }
 0x186   :  { %v517_v20 = vsel %vm365_vm3, %v461_v15, 0.0 }
 0x187   :  { %v418_v22 = vadd.f32 %v417_v18, %v416_v17  ;;  %v518_v28 = vadd.f32 %v517_v20, %v516_v16 }
 0x188   :  { %v2575_v33 = vpop.f32.mrb[28].mxu0 }
 0x189   :  { %v520_v35 = vadd.f32 %v519_v30, %v518_v28  ;;  %v2577_v37 = vpop.f32.mrb[29].mxu0  ;;  %v420_v40 = vadd.f32 %v419_v32, %v418_v22  ;;  %v466_v52 = vmul.f32 %v2575_v33, %v2575_v33  ;;  %v425_v62 = vsel %vm365_vm3, %v2575_v33, 0.0 }
 0x18a   :  { %v421_v44 = vsel %vm365_vm3, %v2577_v37, 0.0  ;;  %v464_v45 = vmul.f32 %v2577_v37, %v2577_v37  ;;  %v2584_v46 = vpop.f32.mrb[30].mxu0 }
 0x18b   :  { %v422_v47 = vadd.f32 %v421_v44, %v420_v40  ;;  %v522_v49 = vadd.f32 %v521_v42, %v520_v35  ;;  %v2586_v50 = vpop.f32.mrb[31].mxu0  ;;  %v467_v63 = vmul.f32 %v2584_v46, %v2584_v46  ;;  %v527_v9 = vsel %vm365_vm3, %v466_v52, 0.0 }
 0x18c   :  { %v523_v53 = vsel %vm365_vm3, %v464_v45, 0.0  ;;  %v423_v54 = vsel %vm365_vm3, %v2586_v50, 0.0  ;;  %v465_v55 = vmul.f32 %v2586_v50, %v2586_v50  ;;  %v427_v12 = vsel %vm365_vm3, %v2584_v46, 0.0 }
 0x18d   :  { %v524_v56 = vadd.f32 %v523_v53, %v522_v49  ;;  %v424_v60 = vadd.f32 %v423_v54, %v422_v47  ;;  %v529_v15 = vsel %vm365_vm3, %v467_v63, 0.0 }
 0x18e   :  { %v525_v2 = vsel %vm365_vm3, %v465_v55, 0.0  ;;  %v559_v55 = vlaneseq }
 0x18f   :  { %v426_v4 = vadd.f32 %v425_v62, %v424_v60  ;;  %v526_v7 = vadd.f32 %v525_v2, %v524_v56  ;;  %v540_v60 = vld [vmem:[%s3307_s1 + $0x8] sm:$0x1] }
 0x190   :  { %v560_v56 = vshrl.u32 %v559_v55, 7 }
 0x191   :  { %v428_v13 = vadd.f32 %v427_v12, %v426_v4  ;;  %v528_v14 = vadd.f32 %v527_v9, %v526_v7  ;;  %v541_v12 = vld [vmem:[%s3307_s1 + $0x10] sm:$0x1] }
 0x192   :  { %v2608_v62 = vsub.s32 0, %v560_v56 }
 0x193   :  { %v429_v16 = vrot.slane %v428_v13, 4  ;;  %v530_v17 = vadd.f32 %v529_v15, %v528_v14 }
 0x195   :  { %v430_v18 = vadd.f32 %v429_v16, %v428_v13  ;;  %v531_v19 = vrot.slane %v530_v17, 4  ;;  %v2291_v16 = vmov 0.0  }
 0x196   :  { %671 = vst.msk [vmem:[#allocation2] sm:$0xff] %vm365_vm3, %v2291_v16  ;;  %1301 = vst.msk [vmem:[#allocation3] sm:$0xff] %vm365_vm3, %v2291_v16 }
 0x197   :  { %v431_v20 = vrot.slane %v430_v18, 2  ;;  %v532_v22 = vadd.f32 %v531_v19, %v530_v17  ;;  %1680 = vst.msk [vmem:[#allocation4] sm:$0xff] %vm365_vm3, %v2291_v16  ;;  %v15_v17 = vld [vmem:[%s3307_s1] sm:$0xff] }
 0x199   :  { %v432_v28 = vadd.f32 %v431_v20, %v430_v18  ;;  %v533_v30 = vrot.slane %v532_v22, 2  ;;  %v16_v18 = vld [vmem:[%s3307_s1 + $0x8] sm:$0xff] }
 0x19a   :  { %v2631_v19 = vpack.c.bf16 %v16_v18, %v15_v17 }
 0x19b   :  { %v433_v32 = vrot.slane %v432_v28, 1  ;;  %v534_v35 = vadd.f32 %v533_v30, %v532_v22 }
 0x19c   :  { %2149 = vmatprep.subr.bf16.mxu1 %v2631_v19 }
 0x19d   :  { %v434_v40 = vadd.f32 %v433_v32, %v432_v28  ;;  %v535_v42 = vrot.slane %v534_v35, 1  ;;  %2150 = vmatpush3.bf16.msra.mxu1 %v2631_v19 }
 0x19f   :  { %v435_v44 = vmul.f32 0.00390625, %v434_v40  ;;  %v536_v45 = vadd.f32 %v535_v42, %v534_v35 }
 0x1a1   :  { %v537_v47 = vmul.f32 0.00390625, %v536_v45  ;;  %v538_v49 = vmul.f32 %v435_v44, %v435_v44 }
 0x1a3   :  { %v539_v52 = vsub.f32 %v537_v47, %v538_v49 }
 0x1a5   :  { %v542_v53 = vadd.f32 1e-05, %v539_v52 }
 0x1a7   :  { %2256 = vrsqrt.f32 %v542_v53 }
 0x1b1   :  { %v2257_v54 = vpop.eup %2256 }
 0x1b2   :  { %545 = vrot.lane.b32.xlu0 %v2257_v54, %s2290_s0 }
 0x224   :  { %v546_v63 = vpop.permute.xlu0 %545 }
 0x225   :  { %v548_v2 = vmul.f32 %v546_v63, %v540_v60 }
 0x227   :  { %v562_v4 = vrot.slane %v548_v2, %v2608_v62  ;;  %550 = vrot.lane.b32.xlu1 %v548_v2, %s2288_s13 }
 0x229   :  { %564 = vrot.lane.b32.xlu0 %v562_v4, %s2288_s13 }
 0x299   :  { %v551_v7 = vpop.permute.xlu1 %550 }
 0x29a   :  { %v553_v9 = vmul.f32 %v551_v7, %v435_v44 }
 0x29b   :  { %v565_v20 = vpop.permute.xlu0 %564 }
 0x29c   :  { %555 = vrot.lane.b32.xlu1 %v553_v9, %s2290_s0  ;;  %v569_v22 = vmul.f32 %v2380_v23, %v565_v20  ;;  %v570_v28 = vmul.f32 %v2386_v26, %v565_v20  ;;  %v567_v30 = vmul.f32 %v565_v20, %v2382_v24  ;;  %v568_v32 = vmul.f32 %v565_v20, %v2388_v27 }
 0x29d   :  { %v573_v35 = vmul.f32 %v2407_v41, %v565_v20  ;;  %v574_v40 = vmul.f32 %v2416_v48, %v565_v20  ;;  %v571_v42 = vmul.f32 %v565_v20, %v2409_v43  ;;  %v572_v44 = vmul.f32 %v565_v20, %v2418_v51 }
 0x29e   :  { %v577_v45 = vmul.f32 %v2435_v1, %v565_v20  ;;  %v578_v47 = vmul.f32 %v2444_v8, %v565_v20  ;;  %v575_v23 = vmul.f32 %v565_v20, %v2437_v3  ;;  %v576_v26 = vmul.f32 %v565_v20, %v2446_v11 }
 0x29f   :  { %v581_v24 = vmul.f32 %v2463_v29, %v565_v20  ;;  %v582_v27 = vmul.f32 %v2472_v36, %v565_v20  ;;  %v579_v41 = vmul.f32 %v565_v20, %v2465_v31  ;;  %v580_v48 = vmul.f32 %v565_v20, %v2474_v39 }
 0x2a0   :  { %v585_v43 = vmul.f32 %v2491_v57, %v565_v20  ;;  %v586_v51 = vmul.f32 %v2500_v0, %v565_v20  ;;  %v583_v1 = vmul.f32 %v565_v20, %v2493_v59  ;;  %v584_v8 = vmul.f32 %v565_v20, %v2502_v5 }
 0x2a1   :  { %v2656_v3 = vmul.f32 %v2519_v21, %v565_v20  ;;  %v2659_v11 = vmul.f32 %v2528_v34, %v565_v20  ;;  %v2662_v29 = vmul.f32 %v565_v20, %v2521_v25  ;;  %v2665_v31 = vmul.f32 %v565_v20, %v2530_v38 }
 0x2a2   :  { %v2668_v36 = vmul.f32 %v2547_v58, %v565_v20  ;;  %v2671_v39 = vmul.f32 %v2556_v6, %v565_v20  ;;  %v2674_v57 = vmul.f32 %v565_v20, %v2549_v61  ;;  %v2677_v59 = vmul.f32 %v565_v20, %v2558_v10 }
 0x2a3   :  { %v2682_v5 = vmul.f32 %v2575_v33, %v565_v20  ;;  %v2685_v21 = vmul.f32 %v2584_v46, %v565_v20  ;;  %v2688_v25 = vmul.f32 %v565_v20, %v2577_v37  ;;  %v2691_v34 = vmul.f32 %v565_v20, %v2586_v50 }
 0x30e   :  { %v556_v13 = vpop.permute.xlu1 %555 }
 0x30f   :  { %v558_v14 = vsub.f32 %v541_v12, %v556_v13 }
 0x311   :  { %v602_v15 = vrot.slane %v558_v14, %v2608_v62 }
 0x313   :  { %604 = vrot.lane.b32.xlu1 %v602_v15, %s2288_s13 }
 0x385   :  { %v2679_v0 = vpop.permute.xlu1 %604 }
 0x386   :  { %v609_v38 = vadd.f32 %v2679_v0, %v569_v22  ;;  %v610_v58 = vadd.f32 %v2679_v0, %v570_v28  ;;  %v607_v61 = vadd.f32 %v2679_v0, %v567_v30  ;;  %v608_v6 = vadd.f32 %v2679_v0, %v568_v32 }
 0x387   :  { %v613_v10 = vadd.f32 %v2679_v0, %v573_v35  ;;  %v614_v33 = vadd.f32 %v2679_v0, %v574_v40  ;;  %v611_v46 = vadd.f32 %v2679_v0, %v571_v42  ;;  %v612_v37 = vadd.f32 %v2679_v0, %v572_v44 }
 0x388   :  { %v641_v49 = vmax.f32 %v609_v38, 0.0  ;;  %v642_v52 = vmax.f32 %v610_v58, 0.0  ;;  %v639_v50 = vmax.f32 %v607_v61, 0.0  ;;  %v640_v53 = vmax.f32 %v608_v6, 0.0  ;;  %v20_v38 = vld [vmem:[%s3307_s1 + $0x28] sm:$0xff] }
 0x389   :  { %v645_v54 = vmax.f32 %v613_v10, 0.0  ;;  %v646_v55 = vmax.f32 %v614_v33, 0.0  ;;  %v643_v56 = vmax.f32 %v611_v46, 0.0  ;;  %v644_v60 = vmax.f32 %v612_v37, 0.0 }
 0x38a   :  { %674 = vst.msk [vmem:[#allocation2 + $0x18] sm:$0xff] %vm365_vm3, %v641_v49  ;;  %675 = vst.msk [vmem:[#allocation2 + $0x20] sm:$0xff] %vm365_vm3, %v642_v52  ;;  %v617_v63 = vadd.f32 %v2679_v0, %v577_v45  ;;  %v618_v2 = vadd.f32 %v2679_v0, %v578_v47  ;;  %v615_v4 = vadd.f32 %v2679_v0, %v575_v23 }
 0x38b   :  { %672 = vst.msk [vmem:[#allocation2 + $0x8] sm:$0xff] %vm365_vm3, %v639_v50  ;;  %673 = vst.msk [vmem:[#allocation2 + $0x10] sm:$0xff] %vm365_vm3, %v640_v53  ;;  %v616_v7 = vadd.f32 %v2679_v0, %v576_v26  ;;  %v621_v9 = vadd.f32 %v2679_v0, %v581_v24  ;;  %v622_v12 = vadd.f32 %v2679_v0, %v582_v27 }
 0x38c   :  { %678 = vst.msk [vmem:[#allocation2 + $0x38] sm:$0xff] %vm365_vm3, %v645_v54  ;;  %679 = vst.msk [vmem:[#allocation2 + $0x40] sm:$0xff] %vm365_vm3, %v646_v55  ;;  %v619_v13 = vadd.f32 %v2679_v0, %v579_v41  ;;  %v620_v14 = vadd.f32 %v2679_v0, %v580_v48  ;;  %v649_v15 = vmax.f32 %v617_v63, 0.0  ;;  %v650_v17 = vmax.f32 %v618_v2, 0.0 }
 0x38d   :  { %676 = vst.msk [vmem:[#allocation2 + $0x28] sm:$0xff] %vm365_vm3, %v643_v56  ;;  %677 = vst.msk [vmem:[#allocation2 + $0x30] sm:$0xff] %vm365_vm3, %v644_v60  ;;  %v647_v18 = vmax.f32 %v615_v4, 0.0  ;;  %v648_v20 = vmax.f32 %v616_v7, 0.0  ;;  %v653_v22 = vmax.f32 %v621_v9, 0.0  ;;  %v654_v28 = vmax.f32 %v622_v12, 0.0 }
 0x38e   :  { %v651_v30 = vmax.f32 %v619_v13, 0.0  ;;  %v652_v32 = vmax.f32 %v620_v14, 0.0  ;;  %682 = vst.msk [vmem:[#allocation2 + $0x58] sm:$0xff] %vm365_vm3, %v649_v15  ;;  %683 = vst.msk [vmem:[#allocation2 + $0x60] sm:$0xff] %vm365_vm3, %v650_v17  ;;  %v625_v35 = vadd.f32 %v2679_v0, %v585_v43  ;;  %v626_v40 = vadd.f32 %v2679_v0, %v586_v51  ;;  %v17_v43 = vld [vmem:[%s3307_s1 + $0x10] sm:$0xff]  ;;  %v18_v51 = vld [vmem:[%s3307_s1 + $0x18] sm:$0xff] }
 0x38f   :  { %680 = vst.msk [vmem:[#allocation2 + $0x48] sm:$0xff] %vm365_vm3, %v647_v18  ;;  %681 = vst.msk [vmem:[#allocation2 + $0x50] sm:$0xff] %vm365_vm3, %v648_v20  ;;  %v623_v42 = vadd.f32 %v2679_v0, %v583_v1  ;;  %v624_v44 = vadd.f32 %v2679_v0, %v584_v8  ;;  %v629_v45 = vadd.f32 %v2679_v0, %v2656_v3  ;;  %v23_v13 = vld [vmem:[%s3307_s1 + $0x40] sm:$0xff]  ;;  %v24_v14 = vld [vmem:[%s3307_s1 + $0x48] sm:$0xff] }
 0x390   :  { %686 = vst.msk [vmem:[#allocation2 + $0x78] sm:$0xff] %vm365_vm3, %v653_v22  ;;  %687 = vst.msk [vmem:[#allocation2 + $0x80] sm:$0xff] %vm365_vm3, %v654_v28  ;;  %v630_v47 = vadd.f32 %v2679_v0, %v2659_v11  ;;  %v627_v23 = vadd.f32 %v2679_v0, %v2662_v29  ;;  %v628_v26 = vadd.f32 %v2679_v0, %v2665_v31  ;;  %v657_v24 = vmax.f32 %v625_v35, 0.0  ;;  %v25_v28 = vld [vmem:[%s3307_s1 + $0x50] sm:$0xff] }
 0x391   :  { %684 = vst.msk [vmem:[#allocation2 + $0x68] sm:$0xff] %vm365_vm3, %v651_v30  ;;  %685 = vst.msk [vmem:[#allocation2 + $0x70] sm:$0xff] %vm365_vm3, %v652_v32  ;;  %v658_v27 = vmax.f32 %v626_v40, 0.0  ;;  %v655_v41 = vmax.f32 %v623_v42, 0.0  ;;  %v656_v48 = vmax.f32 %v624_v44, 0.0  ;;  %v633_v3 = vadd.f32 %v2679_v0, %v2668_v36  ;;  %v26_v30 = vld [vmem:[%s3307_s1 + $0x58] sm:$0xff] }
 0x392   :  { %v755_v1 = vld [vmem:[#allocation2 + $0x18] ss:$2 sm:$0xff]  ;;  %v753_v8 = vld [vmem:[#allocation2 + $0x8] ss:$2 sm:$0xff]  ;;  %v634_v11 = vadd.f32 %v2679_v0, %v2671_v39  ;;  %v631_v29 = vadd.f32 %v2679_v0, %v2674_v57  ;;  %v632_v31 = vadd.f32 %v2679_v0, %v2677_v59  ;;  %690 = vst.msk [vmem:[#allocation2 + $0x98] sm:$0xff] %vm365_vm3, %v657_v24  ;;  %v637_v36 = vadd.f32 %v2679_v0, %v2682_v5 }
 0x393   :  { %802 = vrot.lane.b32.xlu1 %v755_v1, %s2288_s13  ;;  %800 = vrot.lane.b32.xlu0 %v753_v8, %s2288_s13  ;;  %691 = vst.msk [vmem:[#allocation2 + $0xa0] sm:$0xff] %vm365_vm3, %v658_v27  ;;  %688 = vst.msk [vmem:[#allocation2 + $0x88] sm:$0xff] %vm365_vm3, %v655_v41  ;;  %v638_v39 = vadd.f32 %v2679_v0, %v2685_v21  ;;  %v635_v57 = vadd.f32 %v2679_v0, %v2688_v25  ;;  %v19_v59 = vld [vmem:[%s3307_s1 + $0x20] sm:$0xff]  ;;  %v661_v58 = vmax.f32 %v629_v45, 0.0  ;;  %v21_v21 = vld [vmem:[%s3307_s1 + $0x30] sm:$0xff] }
 0x394   :  { %689 = vst.msk [vmem:[#allocation2 + $0x90] sm:$0xff] %vm365_vm3, %v656_v48  ;;  %v662_v61 = vmax.f32 %v630_v47, 0.0  ;;  %v636_v6 = vadd.f32 %v2679_v0, %v2691_v34  ;;  %v2771_v5 = vpack.c.bf16 %v18_v51, %v17_v43  ;;  %v22_v25 = vld [vmem:[%s3307_s1 + $0x38] sm:$0xff]  ;;  %v659_v10 = vmax.f32 %v627_v23, 0.0  ;;  %v757_v50 = vld [vmem:[#allocation2 + $0x28] ss:$2 sm:$0xff] }
 0x395   :  { %v660_v33 = vmax.f32 %v628_v26, 0.0  ;;  %v665_v46 = vmax.f32 %v633_v3, 0.0  ;;  %v666_v37 = vmax.f32 %v634_v11, 0.0  ;;  %v707_v49 = vld [vmem:[#allocation2 + $0x17] ss:$2 sm:$0xff]  ;;  %694 = vst.msk [vmem:[#allocation2 + $0xb8] sm:$0xff] %vm365_vm3, %v661_v58  ;;  %v2783_v0 = vpack.c.bf16 %v20_v38, %v19_v59 }
 0x396   :  { %v759_v52 = vld [vmem:[#allocation2 + $0x38] ss:$2 sm:$0xff]  ;;  %695 = vst.msk [vmem:[#allocation2 + $0xc0] sm:$0xff] %vm365_vm3, %v662_v61  ;;  %737 = vst.msk [vmem:[#allocation5 + $0x8] sm:$0xff] %vm365_vm3, %v707_v49  ;;  %2151 = vmatprep.subr.bf16.mxu1 %v2771_v5  ;;  %v663_v34 = vmax.f32 %v631_v29, 0.0  ;;  %v664_v53 = vmax.f32 %v632_v31, 0.0  ;;  %v2792_v54 = vpack.c.bf16 %v22_v25, %v21_v21  ;;  %v2814_v17 = vpack.c.bf16 %v24_v14, %v23_v13 }
 0x397   :  { %806 = vrot.lane.b32.xlu1 %v759_v52, %s2288_s13  ;;  %804 = vrot.lane.b32.xlu0 %v757_v50, %s2288_s13  ;;  %692 = vst.msk [vmem:[#allocation2 + $0xa8] sm:$0xff] %vm365_vm3, %v659_v10  ;;  %693 = vst.msk [vmem:[#allocation2 + $0xb0] sm:$0xff] %vm365_vm3, %v660_v33  ;;  %v669_v55 = vmax.f32 %v637_v36, 0.0  ;;  %v670_v56 = vmax.f32 %v638_v39, 0.0  ;;  %v667_v60 = vmax.f32 %v635_v57, 0.0  ;;  %v668_v63 = vmax.f32 %v636_v6, 0.0 }
 0x398   :  { %698 = vst.msk [vmem:[#allocation2 + $0xd8] sm:$0xff] %vm365_vm3, %v665_v46  ;;  %699 = vst.msk [vmem:[#allocation2 + $0xe0] sm:$0xff] %vm365_vm3, %v666_v37  ;;  %2152 = vmatpush3.bf16.msra.mxu1 %v2771_v5  ;;  %v705_v2 = vld [vmem:[#allocation2 + $0x7] ss:$2 sm:$0xff]  ;;  %v711_v9 = vld [vmem:[#allocation2 + $0x37] ss:$2 sm:$0xff]  ;;  %v2828_v42 = vpack.c.bf16 %v26_v30, %v25_v28 }
 0x399   :  { %2153 = vmatprep.subr.bf16.mxu1 %v2783_v0  ;;  %v868_v4 = vld [vmem:[#allocation2 + $0x19] ss:$2 sm:$0xff]  ;;  %v866_v7 = vld [vmem:[#allocation2 + $0x9] ss:$2 sm:$0xff]  ;;  %696 = vst.msk [vmem:[#allocation2 + $0xc8] sm:$0xff] %vm365_vm3, %v663_v34  ;;  %697 = vst.msk [vmem:[#allocation2 + $0xd0] sm:$0xff] %vm365_vm3, %v664_v53 }
 0x39a   :  { %736 = vst.msk [vmem:[#allocation5] sm:$0xff] %vm365_vm3, %v705_v2  ;;  %702 = vst.msk [vmem:[#allocation2 + $0xf8] sm:$0xff] %vm365_vm3, %v669_v55  ;;  %v709_v12 = vld [vmem:[#allocation2 + $0x27] ss:$2 sm:$0xff]  ;;  %v715_v15 = vld [vmem:[#allocation2 + $0x57] ss:$2 sm:$0xff] }
 0x39b   :  { %915 = vrot.lane.b32.xlu1 %v868_v4, %s2292_s9  ;;  %913 = vrot.lane.b32.xlu0 %v866_v7, %s2292_s9  ;;  %703 = vst.msk [vmem:[#allocation2 + $0x100] sm:$0xff] %vm365_vm3, %v670_v56  ;;  %700 = vst.msk [vmem:[#allocation2 + $0xe8] sm:$0xff] %vm365_vm3, %v667_v60  ;;  %v713_v18 = vld [vmem:[#allocation2 + $0x47] ss:$2 sm:$0xff]  ;;  %v719_v32 = vld [vmem:[#allocation2 + $0x77] ss:$2 sm:$0xff] }
 0x39c   :  { %701 = vst.msk [vmem:[#allocation2 + $0xf0] sm:$0xff] %vm365_vm3, %v668_v63  ;;  %739 = vst.msk [vmem:[#allocation5 + $0x18] sm:$0xff] %vm365_vm3, %v711_v9  ;;  %2154 = vmatpush3.bf16.msra.mxu1 %v2783_v0  ;;  %v872_v20 = vld [vmem:[#allocation2 + $0x39] ss:$2 sm:$0xff]  ;;  %v870_v22 = vld [vmem:[#allocation2 + $0x29] ss:$2 sm:$0xff] }
 0x39d   :  { %738 = vst.msk [vmem:[#allocation5 + $0x10] sm:$0xff] %vm365_vm3, %v709_v12  ;;  %2155 = vmatprep.subr.bf16.mxu1 %v2792_v54  ;;  %741 = vst.msk [vmem:[#allocation5 + $0x28] sm:$0xff] %vm365_vm3, %v715_v15  ;;  %v717_v35 = vld [vmem:[#allocation2 + $0x67] ss:$2 sm:$0xff]  ;;  %v723_v40 = vld [vmem:[#allocation2 + $0x97] ss:$2 sm:$0xff] }
 0x39e   :  { %740 = vst.msk [vmem:[#allocation5 + $0x20] sm:$0xff] %vm365_vm3, %v713_v18  ;;  %743 = vst.msk [vmem:[#allocation5 + $0x38] sm:$0xff] %vm365_vm3, %v719_v32  ;;  %v721_v44 = vld [vmem:[#allocation2 + $0x87] ss:$2 sm:$0xff]  ;;  %v763_v45 = vld [vmem:[#allocation2 + $0x58] ss:$2 sm:$0xff] }
 0x39f   :  { %919 = vrot.lane.b32.xlu1 %v872_v20, %s2292_s9  ;;  %917 = vrot.lane.b32.xlu0 %v870_v22, %s2292_s9  ;;  %742 = vst.msk [vmem:[#allocation5 + $0x30] sm:$0xff] %vm365_vm3, %v717_v35  ;;  %745 = vst.msk [vmem:[#allocation5 + $0x48] sm:$0xff] %vm365_vm3, %v723_v40  ;;  %v761_v47 = vld [vmem:[#allocation2 + $0x48] ss:$2 sm:$0xff]  ;;  %v727_v23 = vld [vmem:[#allocation2 + $0xb7] ss:$2 sm:$0xff] }
 0x3a0   :  { %2156 = vmatpush3.bf16.msra.mxu1 %v2792_v54  ;;  %744 = vst.msk [vmem:[#allocation5 + $0x40] sm:$0xff] %vm365_vm3, %v721_v44  ;;  %v725_v26 = vld [vmem:[#allocation2 + $0xa7] ss:$2 sm:$0xff]  ;;  %747 = vst.msk [vmem:[#allocation5 + $0x58] sm:$0xff] %vm365_vm3, %v727_v23  ;;  %v731_v24 = vld [vmem:[#allocation2 + $0xd7] ss:$2 sm:$0xff] }
 0x3a1   :  { %2157 = vmatprep.subr.bf16.mxu1 %v2814_v17  ;;  %746 = vst.msk [vmem:[#allocation5 + $0x50] sm:$0xff] %vm365_vm3, %v725_v26  ;;  %v729_v27 = vld [vmem:[#allocation2 + $0xc7] ss:$2 sm:$0xff]  ;;  %749 = vst.msk [vmem:[#allocation5 + $0x68] sm:$0xff] %vm365_vm3, %v731_v24  ;;  %v767_v43 = vld [vmem:[#allocation2 + $0x78] ss:$2 sm:$0xff] }
 0x3a2   :  { %748 = vst.msk [vmem:[#allocation5 + $0x60] sm:$0xff] %vm365_vm3, %v729_v27  ;;  %v765_v51 = vld [vmem:[#allocation2 + $0x68] ss:$2 sm:$0xff]  ;;  %v876_v1 = vld [vmem:[#allocation2 + $0x59] ss:$2 sm:$0xff] }
 0x3a3   :  { %810 = vrot.lane.b32.xlu1 %v763_v45, %s2288_s13  ;;  %808 = vrot.lane.b32.xlu0 %v761_v47, %s2288_s13  ;;  %v735_v41 = vld [vmem:[#allocation2 + $0xf7] ss:$2 sm:$0xff]  ;;  %v733_v48 = vld [vmem:[#allocation2 + $0xe7] ss:$2 sm:$0xff]  ;;  %v771_v29 = vld [vmem:[#allocation2 + $0x98] ss:$2 sm:$0xff] }
 0x3a4   :  { %2158 = vmatpush3.bf16.msra.mxu1 %v2814_v17  ;;  %751 = vst.msk [vmem:[#allocation5 + $0x78] sm:$0xff] %vm365_vm3, %v735_v41  ;;  %750 = vst.msk [vmem:[#allocation5 + $0x70] sm:$0xff] %vm365_vm3, %v733_v48  ;;  %v874_v8 = vld [vmem:[#allocation2 + $0x49] ss:$2 sm:$0xff]  ;;  %v880_v3 = vld [vmem:[#allocation2 + $0x79] ss:$2 sm:$0xff] }
 0x3a5   :  { %2159 = vmatprep.subr.bf16.mxu1 %v2828_v42  ;;  %v878_v11 = vld [vmem:[#allocation2 + $0x69] ss:$2 sm:$0xff]  ;;  %v769_v31 = vld [vmem:[#allocation2 + $0x88] ss:$2 sm:$0xff]  ;;  %v775_v36 = vld [vmem:[#allocation2 + $0xb8] ss:$2 sm:$0xff] }
 0x3a6   :  { %v773_v39 = vld [vmem:[#allocation2 + $0xa8] ss:$2 sm:$0xff]  ;;  %v884_v57 = vld [vmem:[#allocation2 + $0x99] ss:$2 sm:$0xff]  ;;  %v882_v59 = vld [vmem:[#allocation2 + $0x89] ss:$2 sm:$0xff] }
 0x3a7   :  { %814 = vrot.lane.b32.xlu1 %v767_v43, %s2288_s13  ;;  %812 = vrot.lane.b32.xlu0 %v765_v51, %s2288_s13  ;;  %v888_v38 = vld [vmem:[#allocation2 + $0xb9] ss:$2 sm:$0xff]  ;;  %v886_v58 = vld [vmem:[#allocation2 + $0xa9] ss:$2 sm:$0xff]  ;;  %v779_v61 = vld [vmem:[#allocation2 + $0xd8] ss:$2 sm:$0xff] }
 0x3a8   :  { %2160 = vmatpush3.bf16.msra.mxu1 %v2828_v42  ;;  %v777_v6 = vld [vmem:[#allocation2 + $0xc8] ss:$2 sm:$0xff]  ;;  %v783_v21 = vld [vmem:[#allocation2 + $0xf8] ss:$2 sm:$0xff]  ;;  %v892_v10 = vld [vmem:[#allocation2 + $0xd9] ss:$2 sm:$0xff] }
 0x3a9   :  { %v781_v25 = vld [vmem:[#allocation2 + $0xe8] ss:$2 sm:$0xff]  ;;  %v890_v33 = vld [vmem:[#allocation2 + $0xc9] ss:$2 sm:$0xff]  ;;  %v896_v46 = vld [vmem:[#allocation2 + $0xf9] ss:$2 sm:$0xff] }
 0x3aa   :  { %v894_v37 = vld [vmem:[#allocation2 + $0xe9] ss:$2 sm:$0xff] }
 0x3ab   :  { %923 = vrot.lane.b32.xlu1 %v876_v1, %s2292_s9  ;;  %921 = vrot.lane.b32.xlu0 %v874_v8, %s2292_s9 }
 0x3af   :  { %927 = vrot.lane.b32.xlu1 %v880_v3, %s2292_s9  ;;  %925 = vrot.lane.b32.xlu0 %v878_v11, %s2292_s9 }
 0x3b3   :  { %818 = vrot.lane.b32.xlu1 %v771_v29, %s2288_s13  ;;  %816 = vrot.lane.b32.xlu0 %v769_v31, %s2288_s13 }
 0x3b7   :  { %822 = vrot.lane.b32.xlu1 %v775_v36, %s2288_s13  ;;  %820 = vrot.lane.b32.xlu0 %v773_v39, %s2288_s13 }
 0x3bb   :  { %931 = vrot.lane.b32.xlu1 %v884_v57, %s2292_s9  ;;  %929 = vrot.lane.b32.xlu0 %v882_v59, %s2292_s9 }
 0x3bf   :  { %935 = vrot.lane.b32.xlu1 %v888_v38, %s2292_s9  ;;  %933 = vrot.lane.b32.xlu0 %v886_v58, %s2292_s9 }
 0x3c3   :  { %826 = vrot.lane.b32.xlu1 %v779_v61, %s2288_s13  ;;  %824 = vrot.lane.b32.xlu0 %v777_v6, %s2288_s13 }
 0x3c7   :  { %830 = vrot.lane.b32.xlu1 %v783_v21, %s2288_s13  ;;  %828 = vrot.lane.b32.xlu0 %v781_v25, %s2288_s13 }
 0x3cb   :  { %939 = vrot.lane.b32.xlu1 %v892_v10, %s2292_s9  ;;  %937 = vrot.lane.b32.xlu0 %v890_v33, %s2292_s9 }
 0x3cf   :  { %943 = vrot.lane.b32.xlu1 %v896_v46, %s2292_s9  ;;  %941 = vrot.lane.b32.xlu0 %v894_v37, %s2292_s9 }
 0x405   :  { %v803_v49 = vpop.permute.xlu1 %802  ;;  %v801_v52 = vpop.permute.xlu0 %800 }
 0x406   :  { %850 = vst.msk [vmem:[#allocation5 + $0x8] sm:$0xff] %vm848_vm4, %v803_v49  ;;  %849 = vst.msk [vmem:[#allocation5] sm:$0xff] %vm848_vm4, %v801_v52 }
 0x409   :  { %v807_v50 = vpop.permute.xlu1 %806  ;;  %v805_v34 = vpop.permute.xlu0 %804 }
 0x40a   :  { %852 = vst.msk [vmem:[#allocation5 + $0x18] sm:$0xff] %vm848_vm4, %v807_v50  ;;  %851 = vst.msk [vmem:[#allocation5 + $0x10] sm:$0xff] %vm848_vm4, %v805_v34 }
 0x40d   :  { %v916_v53 = vpop.permute.xlu1 %915  ;;  %v914_v55 = vpop.permute.xlu0 %913 }
 0x40e   :  { %963 = vst.msk [vmem:[#allocation5 + $0x8] sm:$0xff] %vm961_vm5, %v916_v53  ;;  %962 = vst.msk [vmem:[#allocation5] sm:$0xff] %vm961_vm5, %v914_v55 }
 0x411   :  { %v920_v56 = vpop.permute.xlu1 %919  ;;  %v918_v60 = vpop.permute.xlu0 %917 }
 0x412   :  { %965 = vst.msk [vmem:[#allocation5 + $0x18] sm:$0xff] %vm961_vm5, %v920_v56  ;;  %964 = vst.msk [vmem:[#allocation5 + $0x10] sm:$0xff] %vm961_vm5, %v918_v60 }
 0x415   :  { %v811_v63 = vpop.permute.xlu1 %810  ;;  %v809_v2 = vpop.permute.xlu0 %808  ;;  %v978_v4 = vld [vmem:[#allocation5] sm:$0xff]  ;;  %v979_v7 = vld [vmem:[#allocation5 + $0x8] sm:$0xff] }
 0x416   :  { %854 = vst.msk [vmem:[#allocation5 + $0x28] sm:$0xff] %vm848_vm4, %v811_v63  ;;  %853 = vst.msk [vmem:[#allocation5 + $0x20] sm:$0xff] %vm848_vm4, %v809_v2  ;;  %v994_v9 = vpack.c.bf16 %v979_v7, %v978_v4 }
 0x418   :  { %2161 = vmatprep.mubr.msk.bf16.mxu1 %vm1002_vm6, %v994_v9 }
 0x419   :  { %v815_v12 = vpop.permute.xlu1 %814  ;;  %v813_v13 = vpop.permute.xlu0 %812  ;;  %v980_v14 = vld [vmem:[#allocation5 + $0x10] sm:$0xff]  ;;  %v981_v15 = vld [vmem:[#allocation5 + $0x18] sm:$0xff] }
 0x41a   :  { %856 = vst.msk [vmem:[#allocation5 + $0x38] sm:$0xff] %vm848_vm4, %v815_v12  ;;  %855 = vst.msk [vmem:[#allocation5 + $0x30] sm:$0xff] %vm848_vm4, %v813_v13  ;;  %v995_v18 = vpack.c.bf16 %v981_v15, %v980_v14 }
 0x41c   :  { %2162 = vmatmul.mubr.msk.bf16.vlgmr.msra.gmra.mrb[0].mxu1 %vm1002_vm6, %v995_v18 }
 0x41d   :  { %v924_v20 = vpop.permute.xlu1 %923  ;;  %v922_v22 = vpop.permute.xlu0 %921 }
 0x41e   :  { %967 = vst.msk [vmem:[#allocation5 + $0x28] sm:$0xff] %vm961_vm5, %v924_v20  ;;  %966 = vst.msk [vmem:[#allocation5 + $0x20] sm:$0xff] %vm961_vm5, %v922_v22 }
 0x421   :  { %v928_v28 = vpop.permute.xlu1 %927  ;;  %v926_v30 = vpop.permute.xlu0 %925 }
 0x422   :  { %969 = vst.msk [vmem:[#allocation5 + $0x38] sm:$0xff] %vm961_vm5, %v928_v28  ;;  %968 = vst.msk [vmem:[#allocation5 + $0x30] sm:$0xff] %vm961_vm5, %v926_v30 }
 0x425   :  { %v819_v32 = vpop.permute.xlu1 %818  ;;  %v817_v35 = vpop.permute.xlu0 %816  ;;  %v982_v40 = vld [vmem:[#allocation5 + $0x20] sm:$0xff]  ;;  %v983_v44 = vld [vmem:[#allocation5 + $0x28] sm:$0xff] }
 0x426   :  { %858 = vst.msk [vmem:[#allocation5 + $0x48] sm:$0xff] %vm848_vm4, %v819_v32  ;;  %857 = vst.msk [vmem:[#allocation5 + $0x40] sm:$0xff] %vm848_vm4, %v817_v35  ;;  %v996_v45 = vpack.c.bf16 %v983_v44, %v982_v40 }
 0x428   :  { %2165 = vmatprep.mubr.msk.bf16.mxu1 %vm1002_vm6, %v996_v45 }
 0x429   :  { %v823_v47 = vpop.permute.xlu1 %822  ;;  %v821_v23 = vpop.permute.xlu0 %820  ;;  %v984_v26 = vld [vmem:[#allocation5 + $0x30] sm:$0xff]  ;;  %v985_v24 = vld [vmem:[#allocation5 + $0x38] sm:$0xff] }
 0x42a   :  { %860 = vst.msk [vmem:[#allocation5 + $0x58] sm:$0xff] %vm848_vm4, %v823_v47  ;;  %859 = vst.msk [vmem:[#allocation5 + $0x50] sm:$0xff] %vm848_vm4, %v821_v23  ;;  %v997_v27 = vpack.c.bf16 %v985_v24, %v984_v26 }
 0x42c   :  { %2166 = vmatmul.mubr.msk.bf16.gmra.mrb[4].mxu1 %vm1002_vm6, %v997_v27 }
 0x42d   :  { %v932_v41 = vpop.permute.xlu1 %931  ;;  %v930_v48 = vpop.permute.xlu0 %929 }
 0x42e   :  { %971 = vst.msk [vmem:[#allocation5 + $0x48] sm:$0xff] %vm961_vm5, %v932_v41  ;;  %970 = vst.msk [vmem:[#allocation5 + $0x40] sm:$0xff] %vm961_vm5, %v930_v48 }
 0x431   :  { %v936_v43 = vpop.permute.xlu1 %935  ;;  %v934_v51 = vpop.permute.xlu0 %933 }
 0x432   :  { %973 = vst.msk [vmem:[#allocation5 + $0x58] sm:$0xff] %vm961_vm5, %v936_v43  ;;  %972 = vst.msk [vmem:[#allocation5 + $0x50] sm:$0xff] %vm961_vm5, %v934_v51 }
 0x435   :  { %v827_v1 = vpop.permute.xlu1 %826  ;;  %v825_v8 = vpop.permute.xlu0 %824  ;;  %v986_v3 = vld [vmem:[#allocation5 + $0x40] sm:$0xff]  ;;  %v987_v11 = vld [vmem:[#allocation5 + $0x48] sm:$0xff] }
 0x436   :  { %862 = vst.msk [vmem:[#allocation5 + $0x68] sm:$0xff] %vm848_vm4, %v827_v1  ;;  %861 = vst.msk [vmem:[#allocation5 + $0x60] sm:$0xff] %vm848_vm4, %v825_v8  ;;  %v998_v29 = vpack.c.bf16 %v987_v11, %v986_v3 }
 0x438   :  { %2169 = vmatprep.mubr.msk.bf16.mxu1 %vm1002_vm6, %v998_v29 }
 0x439   :  { %v831_v31 = vpop.permute.xlu1 %830  ;;  %v829_v36 = vpop.permute.xlu0 %828  ;;  %v988_v39 = vld [vmem:[#allocation5 + $0x50] sm:$0xff]  ;;  %v989_v57 = vld [vmem:[#allocation5 + $0x58] sm:$0xff] }
 0x43a   :  { %864 = vst.msk [vmem:[#allocation5 + $0x78] sm:$0xff] %vm848_vm4, %v831_v31  ;;  %863 = vst.msk [vmem:[#allocation5 + $0x70] sm:$0xff] %vm848_vm4, %v829_v36  ;;  %v999_v59 = vpack.c.bf16 %v989_v57, %v988_v39 }
 0x43c   :  { %2170 = vmatmul.mubr.msk.bf16.gmra.mrb[8].mxu1 %vm1002_vm6, %v999_v59 }
 0x43d   :  { %v940_v38 = vpop.permute.xlu1 %939  ;;  %v938_v58 = vpop.permute.xlu0 %937 }
 0x43e   :  { %975 = vst.msk [vmem:[#allocation5 + $0x68] sm:$0xff] %vm961_vm5, %v940_v38  ;;  %974 = vst.msk [vmem:[#allocation5 + $0x60] sm:$0xff] %vm961_vm5, %v938_v58 }
 0x441   :  { %v944_v61 = vpop.permute.xlu1 %943  ;;  %v942_v6 = vpop.permute.xlu0 %941 }
 0x442   :  { %977 = vst.msk [vmem:[#allocation5 + $0x78] sm:$0xff] %vm961_vm5, %v944_v61  ;;  %976 = vst.msk [vmem:[#allocation5 + $0x70] sm:$0xff] %vm961_vm5, %v942_v6 }
 0x445   :  { %v990_v21 = vld [vmem:[#allocation5 + $0x60] sm:$0xff]  ;;  %v991_v25 = vld [vmem:[#allocation5 + $0x68] sm:$0xff] }
 0x446   :  { %v1000_v10 = vpack.c.bf16 %v991_v25, %v990_v21 }
 0x448   :  { %2173 = vmatprep.mubr.msk.bf16.mxu1 %vm1002_vm6, %v1000_v10 }
 0x449   :  { %v992_v33 = vld [vmem:[#allocation5 + $0x70] sm:$0xff]  ;;  %v993_v46 = vld [vmem:[#allocation5 + $0x78] sm:$0xff] }
 0x44a   :  { %v1001_v37 = vpack.c.bf16 %v993_v46, %v992_v33 }
 0x44c   :  { %2174 = vmatmul.mubr.msk.bf16.gmra.mrb[12].mxu1 %vm1002_vm6, %v1001_v37 }
 0x4ef   :  { %v2907_v49 = vpop.f32.mrb[0].mxu1 }
 0x4f0   :  { %v2909_v52 = vpop.f32.mrb[1].mxu1  ;;  %v1164_v55 = vmul.f32 %v2907_v49, %v2907_v49  ;;  %v1127_v4 = vsel %vm365_vm3, %v2907_v49, 0.0 }
 0x4f1   :  { %v1162_v50 = vmul.f32 %v2909_v52, %v2909_v52  ;;  %v2913_v34 = vpop.f32.mrb[2].mxu1  ;;  %v1124_v56 = vsel %vm365_vm3, %v2909_v52, 0.0 }
 0x4f2   :  { %v2915_v53 = vpop.f32.mrb[3].mxu1  ;;  %v1165_v9 = vmul.f32 %v2913_v34, %v2913_v34  ;;  %v1181_v15 = vsel %vm365_vm3, %v1164_v55, 0.0  ;;  %v1129_v18 = vsel %vm365_vm3, %v2913_v34, 0.0 }
 0x4f3   :  { %v1125_v60 = vsel %vm365_vm3, %v2915_v53, 0.0  ;;  %v1163_v63 = vmul.f32 %v2915_v53, %v2915_v53  ;;  %v1178_v7 = vsel %vm365_vm3, %v1162_v50, 0.0 }
 0x4f4   :  { %v1126_v2 = vadd.f32 %v1125_v60, %v1124_v56  ;;  %v1183_v28 = vsel %vm365_vm3, %v1165_v9, 0.0 }
 0x4f5   :  { %v1179_v12 = vsel %vm365_vm3, %v1163_v63, 0.0 }
 0x4f6   :  { %v1128_v13 = vadd.f32 %v1127_v4, %v1126_v2  ;;  %v1180_v14 = vadd.f32 %v1179_v12, %v1178_v7 }
 0x4f8   :  { %v1182_v20 = vadd.f32 %v1181_v15, %v1180_v14  ;;  %v1130_v22 = vadd.f32 %v1129_v18, %v1128_v13 }
 0x4fa   :  { %v1184_v30 = vadd.f32 %v1183_v28, %v1182_v20 }
 0x4ff   :  { %v2935_v32 = vpop.f32.mrb[4].mxu1 }
 0x500   :  { %v2937_v35 = vpop.f32.mrb[5].mxu1  ;;  %v1168_v26 = vmul.f32 %v2935_v32, %v2935_v32  ;;  %v1135_v51 = vsel %vm365_vm3, %v2935_v32, 0.0 }
 0x501   :  { %v1131_v40 = vsel %vm365_vm3, %v2937_v35, 0.0  ;;  %v1166_v44 = vmul.f32 %v2937_v35, %v2937_v35  ;;  %v2943_v45 = vpop.f32.mrb[6].mxu1 }
 0x502   :  { %v1132_v47 = vadd.f32 %v1131_v40, %v1130_v22  ;;  %v2945_v23 = vpop.f32.mrb[7].mxu1  ;;  %v1169_v1 = vmul.f32 %v2943_v45, %v2943_v45  ;;  %v1189_v29 = vsel %vm365_vm3, %v1168_v26, 0.0  ;;  %v1137_v31 = vsel %vm365_vm3, %v2943_v45, 0.0 }
 0x503   :  { %v1185_v24 = vsel %vm365_vm3, %v1166_v44, 0.0  ;;  %v1133_v27 = vsel %vm365_vm3, %v2945_v23, 0.0  ;;  %v1167_v41 = vmul.f32 %v2945_v23, %v2945_v23 }
 0x504   :  { %v1186_v48 = vadd.f32 %v1185_v24, %v1184_v30  ;;  %v1134_v43 = vadd.f32 %v1133_v27, %v1132_v47  ;;  %v1191_v57 = vsel %vm365_vm3, %v1169_v1, 0.0 }
 0x505   :  { %v1187_v8 = vsel %vm365_vm3, %v1167_v41, 0.0 }
 0x506   :  { %v1136_v3 = vadd.f32 %v1135_v51, %v1134_v43  ;;  %v1188_v11 = vadd.f32 %v1187_v8, %v1186_v48 }
 0x508   :  { %v1190_v36 = vadd.f32 %v1189_v29, %v1188_v11  ;;  %v1138_v39 = vadd.f32 %v1137_v31, %v1136_v3 }
 0x50a   :  { %v1192_v59 = vadd.f32 %v1191_v57, %v1190_v36 }
 0x50f   :  { %v2963_v38 = vpop.f32.mrb[8].mxu1 }
 0x510   :  { %v2965_v58 = vpop.f32.mrb[9].mxu1  ;;  %v1172_v33 = vmul.f32 %v2963_v38, %v2963_v38  ;;  %v1143_v60 = vsel %vm365_vm3, %v2963_v38, 0.0 }
 0x511   :  { %v1139_v61 = vsel %vm365_vm3, %v2965_v58, 0.0  ;;  %v1170_v6 = vmul.f32 %v2965_v58, %v2965_v58  ;;  %v2971_v21 = vpop.f32.mrb[10].mxu1 }
 0x512   :  { %v1140_v25 = vadd.f32 %v1139_v61, %v1138_v39  ;;  %v2973_v10 = vpop.f32.mrb[11].mxu1  ;;  %v1173_v63 = vmul.f32 %v2971_v21, %v2971_v21  ;;  %v1197_v9 = vsel %vm365_vm3, %v1172_v33, 0.0  ;;  %v1145_v12 = vsel %vm365_vm3, %v2971_v21, 0.0 }
 0x513   :  { %v1193_v46 = vsel %vm365_vm3, %v1170_v6, 0.0  ;;  %v1141_v37 = vsel %vm365_vm3, %v2973_v10, 0.0  ;;  %v1171_v50 = vmul.f32 %v2973_v10, %v2973_v10 }
 0x514   :  { %v1194_v55 = vadd.f32 %v1193_v46, %v1192_v59  ;;  %v1142_v56 = vadd.f32 %v1141_v37, %v1140_v25  ;;  %v1199_v15 = vsel %vm365_vm3, %v1173_v63, 0.0 }
 0x515   :  { %v1195_v2 = vsel %vm365_vm3, %v1171_v50, 0.0 }
 0x516   :  { %v1144_v4 = vadd.f32 %v1143_v60, %v1142_v56  ;;  %v1196_v7 = vadd.f32 %v1195_v2, %v1194_v55 }
 0x518   :  { %v1198_v13 = vadd.f32 %v1197_v9, %v1196_v7  ;;  %v1146_v14 = vadd.f32 %v1145_v12, %v1144_v4 }
 0x51a   :  { %v1200_v18 = vadd.f32 %v1199_v15, %v1198_v13  ;;  %v1218_v15 = vld [vmem:[%s3307_s1 + $0x9] sm:$0x1] }
 0x51f   :  { %v2991_v20 = vpop.f32.mrb[12].mxu1 }
 0x520   :  { %v2993_v22 = vpop.f32.mrb[13].mxu1  ;;  %v1176_v26 = vmul.f32 %v2991_v20, %v2991_v20  ;;  %v1151_v51 = vsel %vm365_vm3, %v2991_v20, 0.0 }
 0x521   :  { %v1147_v28 = vsel %vm365_vm3, %v2993_v22, 0.0  ;;  %v1174_v30 = vmul.f32 %v2993_v22, %v2993_v22  ;;  %v2999_v40 = vpop.f32.mrb[14].mxu1 }
 0x522   :  { %v1148_v44 = vadd.f32 %v1147_v28, %v1146_v14  ;;  %v3001_v47 = vpop.f32.mrb[15].mxu1  ;;  %v1177_v1 = vmul.f32 %v2999_v40, %v2999_v40  ;;  %v1205_v29 = vsel %vm365_vm3, %v1176_v26, 0.0  ;;  %v1153_v31 = vsel %vm365_vm3, %v2999_v40, 0.0 }
 0x523   :  { %v1201_v24 = vsel %vm365_vm3, %v1174_v30, 0.0  ;;  %v1149_v27 = vsel %vm365_vm3, %v3001_v47, 0.0  ;;  %v1175_v41 = vmul.f32 %v3001_v47, %v3001_v47 }
 0x524   :  { %v1202_v48 = vadd.f32 %v1201_v24, %v1200_v18  ;;  %v1150_v43 = vadd.f32 %v1149_v27, %v1148_v44  ;;  %v1207_v57 = vsel %vm365_vm3, %v1177_v1, 0.0  ;;  %v1219_v24 = vld [vmem:[%s3307_s1 + $0x11] sm:$0x1] }
 0x525   :  { %v1203_v8 = vsel %vm365_vm3, %v1175_v41, 0.0 }
 0x526   :  { %v1152_v3 = vadd.f32 %v1151_v51, %v1150_v43  ;;  %v1204_v11 = vadd.f32 %v1203_v8, %v1202_v48 }
 0x528   :  { %v1154_v36 = vadd.f32 %v1153_v31, %v1152_v3  ;;  %v1206_v39 = vadd.f32 %v1205_v29, %v1204_v11 }
 0x52a   :  { %v1155_v59 = vrot.slane %v1154_v36, 4  ;;  %v1208_v61 = vadd.f32 %v1207_v57, %v1206_v39 }
 0x52c   :  { %v1156_v6 = vadd.f32 %v1155_v59, %v1154_v36  ;;  %v1209_v25 = vrot.slane %v1208_v61, 4 }
 0x52e   :  { %v1157_v33 = vrot.slane %v1156_v6, 2  ;;  %v1210_v46 = vadd.f32 %v1209_v25, %v1208_v61 }
 0x530   :  { %v1158_v37 = vadd.f32 %v1157_v33, %v1156_v6  ;;  %v1211_v50 = vrot.slane %v1210_v46, 2 }
 0x532   :  { %v1159_v55 = vrot.slane %v1158_v37, 1  ;;  %v1212_v56 = vadd.f32 %v1211_v50, %v1210_v46 }
 0x534   :  { %v1160_v60 = vadd.f32 %v1159_v55, %v1158_v37  ;;  %v1213_v63 = vrot.slane %v1212_v56, 1 }
 0x536   :  { %v1161_v2 = vmul.f32 0.0078125, %v1160_v60  ;;  %v1214_v4 = vadd.f32 %v1213_v63, %v1212_v56 }
 0x538   :  { %v1215_v7 = vmul.f32 0.0078125, %v1214_v4  ;;  %v1216_v9 = vmul.f32 %v1161_v2, %v1161_v2 }
 0x53a   :  { %v1217_v12 = vsub.f32 %v1215_v7, %v1216_v9 }
 0x53c   :  { %v1220_v13 = vadd.f32 1e-05, %v1217_v12 }
 0x53e   :  { %2258 = vrsqrt.f32 %v1220_v13 }
 0x548   :  { %v2259_v14 = vpop.eup %2258 }
 0x549   :  { %1223 = vrot.lane.b32.xlu0 %v2259_v14, %s2290_s0 }
 0x5bb   :  { %v1224_v18 = vpop.permute.xlu0 %1223 }
 0x5bc   :  { %v1226_v28 = vmul.f32 %v1224_v18, %v1218_v15 }
 0x5be   :  { %1228 = vrot.lane.b32.xlu1 %v1226_v28, %s2288_s13  ;;  %v1240_v30 = vrot.slane %v1226_v28, %v2608_v62 }
 0x5c2   :  { %1242 = vrot.lane.b32.xlu1 %v1240_v30, %s2288_s13 }
 0x5c6   :  { %1472 = vrot.lane.b32.xlu1 %v2631_v19, %s2290_s0 }
 0x5ca   :  { %1476 = vrot.lane.b32.xlu1 %v2783_v0, %s2290_s0 }
 0x5ce   :  { %1480 = vrot.lane.b32.xlu1 %v2814_v17, %s2290_s0 }
 0x630   :  { %v1229_v44 = vpop.permute.xlu1 %1228 }
 0x631   :  { %v1231_v26 = vmul.f32 %v1229_v44, %v1161_v2 }
 0x633   :  { %1233 = vrot.lane.b32.xlu0 %v1231_v26, %s2290_s0 }
 0x634   :  { %v1243_v43 = vpop.permute.xlu1 %1242 }
 0x635   :  { %v1247_v1 = vmul.f32 %v2907_v49, %v1243_v43  ;;  %v1248_v8 = vmul.f32 %v2913_v34, %v1243_v43  ;;  %v1245_v3 = vmul.f32 %v1243_v43, %v2909_v52  ;;  %v1246_v11 = vmul.f32 %v1243_v43, %v2915_v53 }
 0x636   :  { %v1249_v29 = vmul.f32 %v1243_v43, %v2937_v35  ;;  %v1250_v31 = vmul.f32 %v1243_v43, %v2945_v23  ;;  %v1251_v36 = vmul.f32 %v2935_v32, %v1243_v43  ;;  %v1252_v39 = vmul.f32 %v2943_v45, %v1243_v43 }
 0x637   :  { %v1255_v57 = vmul.f32 %v2963_v38, %v1243_v43  ;;  %v1256_v59 = vmul.f32 %v2971_v21, %v1243_v43  ;;  %v1253_v49 = vmul.f32 %v1243_v43, %v2965_v58  ;;  %v1254_v34 = vmul.f32 %v1243_v43, %v2973_v10 }
 0x638   :  { %v1473_v51 = vpop.permute.xlu1 %1472  ;;  %v1257_v52 = vmul.f32 %v1243_v43, %v2993_v22  ;;  %v1258_v53 = vmul.f32 %v1243_v43, %v3001_v47  ;;  %v1259_v35 = vmul.f32 %v2991_v20, %v1243_v43  ;;  %v1260_v23 = vmul.f32 %v2999_v40, %v1243_v43 }
 0x639   :  { %2177 = vmatprep.subr.bf16.mxu1 %v1473_v51 }
 0x63a   :  { %2178 = vmatpush3.bf16.msra.mxu1 %v1473_v51 }
 0x63c   :  { %v1477_v20 = vpop.permute.xlu1 %1476 }
 0x640   :  { %v1481_v43 = vpop.permute.xlu1 %1480 }
 0x6a5   :  { %v1234_v27 = vpop.permute.xlu0 %1233 }
 0x6a6   :  { %v1236_v41 = vsub.f32 %v1219_v24, %v1234_v27 }
 0x6a8   :  { %v1264_v48 = vrot.slane %v1236_v41, %v2608_v62 }
 0x6aa   :  { %1266 = vrot.lane.b32.xlu0 %v1264_v48, %s2288_s13 }
 0x6ae   :  { %1474 = vrot.lane.b32.xlu0 %v2771_v5, %s2290_s0 }
 0x6b2   :  { %1478 = vrot.lane.b32.xlu0 %v2792_v54, %s2290_s0 }
 0x6b6   :  { %1482 = vrot.lane.b32.xlu0 %v2828_v42, %s2290_s0 }
 0x71c   :  { %v1267_v61 = vpop.permute.xlu0 %1266 }
 0x71d   :  { %v1271_v32 = vadd.f32 %v1267_v61, %v1247_v1  ;;  %v1272_v6 = vadd.f32 %v1267_v61, %v1248_v8  ;;  %v1269_v45 = vadd.f32 %v1267_v61, %v1245_v3  ;;  %v1270_v25 = vadd.f32 %v1267_v61, %v1246_v11 }
 0x71e   :  { %v1273_v38 = vadd.f32 %v1267_v61, %v1249_v29  ;;  %v1274_v33 = vadd.f32 %v1267_v61, %v1250_v31  ;;  %v1275_v21 = vadd.f32 %v1267_v61, %v1251_v36  ;;  %v1276_v46 = vadd.f32 %v1267_v61, %v1252_v39 }
 0x71f   :  { %v1287_v58 = vmax.f32 %v1271_v32, 0.0  ;;  %v1288_v37 = vmax.f32 %v1272_v6, 0.0  ;;  %v1285_v10 = vmax.f32 %v1269_v45, 0.0  ;;  %v1286_v50 = vmax.f32 %v1270_v25, 0.0 }
 0x720   :  { %v1289_v55 = vmax.f32 %v1273_v38, 0.0  ;;  %v1290_v22 = vmax.f32 %v1274_v33, 0.0  ;;  %v1291_v56 = vmax.f32 %v1275_v21, 0.0  ;;  %v1292_v47 = vmax.f32 %v1276_v46, 0.0  ;;  %v1475_v60 = vpop.permute.xlu0 %1474 }
 0x721   :  { %1304 = vst.msk [vmem:[#allocation3 + $0x18] sm:$0xff] %vm365_vm3, %v1287_v58  ;;  %1305 = vst.msk [vmem:[#allocation3 + $0x20] sm:$0xff] %vm365_vm3, %v1288_v37  ;;  %v1279_v40 = vadd.f32 %v1267_v61, %v1255_v57  ;;  %v1280_v63 = vadd.f32 %v1267_v61, %v1256_v59  ;;  %v1277_v2 = vadd.f32 %v1267_v61, %v1253_v49  ;;  %2179 = vmatprep.subr.bf16.mxu1 %v1475_v60 }
 0x722   :  { %1302 = vst.msk [vmem:[#allocation3 + $0x8] sm:$0xff] %vm365_vm3, %v1285_v10  ;;  %1303 = vst.msk [vmem:[#allocation3 + $0x10] sm:$0xff] %vm365_vm3, %v1286_v50  ;;  %v1278_v4 = vadd.f32 %v1267_v61, %v1254_v34  ;;  %v1281_v7 = vadd.f32 %v1267_v61, %v1257_v52  ;;  %v1282_v9 = vadd.f32 %v1267_v61, %v1258_v53  ;;  %2180 = vmatpush3.bf16.msra.mxu1 %v1475_v60 }
 0x723   :  { %1306 = vst.msk [vmem:[#allocation3 + $0x28] sm:$0xff] %vm365_vm3, %v1289_v55  ;;  %1307 = vst.msk [vmem:[#allocation3 + $0x30] sm:$0xff] %vm365_vm3, %v1290_v22  ;;  %v1283_v12 = vadd.f32 %v1267_v61, %v1259_v35  ;;  %v1284_v13 = vadd.f32 %v1267_v61, %v1260_v23  ;;  %v1295_v14 = vmax.f32 %v1279_v40, 0.0  ;;  %v1296_v15 = vmax.f32 %v1280_v63, 0.0  ;;  %2181 = vmatprep.subr.bf16.mxu1 %v1477_v20 }
 0x724   :  { %1308 = vst.msk [vmem:[#allocation3 + $0x38] sm:$0xff] %vm365_vm3, %v1291_v56  ;;  %1309 = vst.msk [vmem:[#allocation3 + $0x40] sm:$0xff] %vm365_vm3, %v1292_v47  ;;  %v1293_v18 = vmax.f32 %v1277_v2, 0.0  ;;  %v1294_v28 = vmax.f32 %v1278_v4, 0.0  ;;  %v1297_v30 = vmax.f32 %v1281_v7, 0.0  ;;  %v1298_v44 = vmax.f32 %v1282_v9, 0.0  ;;  %v1479_v27 = vpop.permute.xlu0 %1478 }
 0x725   :  { %v1299_v26 = vmax.f32 %v1283_v12, 0.0  ;;  %v1300_v24 = vmax.f32 %v1284_v13, 0.0  ;;  %1312 = vst.msk [vmem:[#allocation3 + $0x58] sm:$0xff] %vm365_vm3, %v1295_v14  ;;  %1313 = vst.msk [vmem:[#allocation3 + $0x60] sm:$0xff] %vm365_vm3, %v1296_v15 }
 0x726   :  { %1310 = vst.msk [vmem:[#allocation3 + $0x48] sm:$0xff] %vm365_vm3, %v1293_v18  ;;  %1311 = vst.msk [vmem:[#allocation3 + $0x50] sm:$0xff] %vm365_vm3, %v1294_v28  ;;  %2182 = vmatpush3.bf16.msra.mxu1 %v1477_v20 }
 0x727   :  { %1314 = vst.msk [vmem:[#allocation3 + $0x68] sm:$0xff] %vm365_vm3, %v1297_v30  ;;  %1315 = vst.msk [vmem:[#allocation3 + $0x70] sm:$0xff] %vm365_vm3, %v1298_v44  ;;  %2183 = vmatprep.subr.bf16.mxu1 %v1479_v27 }
 0x728   :  { %1316 = vst.msk [vmem:[#allocation3 + $0x78] sm:$0xff] %vm365_vm3, %v1299_v26  ;;  %1317 = vst.msk [vmem:[#allocation3 + $0x80] sm:$0xff] %vm365_vm3, %v1300_v24  ;;  %v1345_v41 = vld [vmem:[#allocation3 + $0x18] ss:$2 sm:$0xff]  ;;  %v1483_v31 = vpop.permute.xlu0 %1482  ;;  %v1401_v34 = vld [vmem:[#allocation3 + $0x19] ss:$2 sm:$0xff] }
 0x729   :  { %v1343_v48 = vld [vmem:[#allocation3 + $0x8] ss:$2 sm:$0xff]  ;;  %1368 = vrot.lane.b32.xlu1 %v1345_v41, %s2288_s13  ;;  %v1319_v51 = vld [vmem:[#allocation3 + $0x7] ss:$2 sm:$0xff]  ;;  %v1321_v1 = vld [vmem:[#allocation3 + $0x17] ss:$2 sm:$0xff] }
 0x72a   :  { %1366 = vrot.lane.b32.xlu0 %v1343_v48, %s2288_s13  ;;  %2184 = vmatpush3.bf16.msra.mxu1 %v1479_v27  ;;  %1334 = vst.msk [vmem:[#allocation5] sm:$0xff] %vm365_vm3, %v1319_v51  ;;  %v1323_v3 = vld [vmem:[#allocation3 + $0x27] ss:$2 sm:$0xff]  ;;  %v1347_v11 = vld [vmem:[#allocation3 + $0x28] ss:$2 sm:$0xff]  ;;  %1335 = vst.msk [vmem:[#allocation5 + $0x8] sm:$0xff] %vm365_vm3, %v1321_v1 }
 0x72b   :  { %2185 = vmatprep.subr.bf16.mxu1 %v1481_v43  ;;  %v1325_v8 = vld [vmem:[#allocation3 + $0x37] ss:$2 sm:$0xff]  ;;  %v1349_v29 = vld [vmem:[#allocation3 + $0x38] ss:$2 sm:$0xff]  ;;  %1336 = vst.msk [vmem:[#allocation5 + $0x10] sm:$0xff] %vm365_vm3, %v1323_v3 }
 0x72c   :  { %1337 = vst.msk [vmem:[#allocation5 + $0x18] sm:$0xff] %vm365_vm3, %v1325_v8  ;;  %v1399_v49 = vld [vmem:[#allocation3 + $0x9] ss:$2 sm:$0xff]  ;;  %v1405_v52 = vld [vmem:[#allocation3 + $0x39] ss:$2 sm:$0xff] }
 0x72d   :  { %1370 = vrot.lane.b32.xlu1 %v1347_v11, %s2288_s13  ;;  %v1327_v36 = vld [vmem:[#allocation3 + $0x47] ss:$2 sm:$0xff]  ;;  %v1329_v39 = vld [vmem:[#allocation3 + $0x57] ss:$2 sm:$0xff]  ;;  %v1353_v53 = vld [vmem:[#allocation3 + $0x58] ss:$2 sm:$0xff] }
 0x72e   :  { %1372 = vrot.lane.b32.xlu0 %v1349_v29, %s2288_s13  ;;  %2186 = vmatpush3.bf16.msra.mxu1 %v1481_v43  ;;  %1338 = vst.msk [vmem:[#allocation5 + $0x20] sm:$0xff] %vm365_vm3, %v1327_v36  ;;  %v1331_v59 = vld [vmem:[#allocation3 + $0x67] ss:$2 sm:$0xff]  ;;  %1339 = vst.msk [vmem:[#allocation5 + $0x28] sm:$0xff] %vm365_vm3, %v1329_v39  ;;  %v1351_v35 = vld [vmem:[#allocation3 + $0x48] ss:$2 sm:$0xff] }
 0x72f   :  { %2187 = vmatprep.subr.bf16.mxu1 %v1483_v31  ;;  %v1333_v57 = vld [vmem:[#allocation3 + $0x77] ss:$2 sm:$0xff]  ;;  %1340 = vst.msk [vmem:[#allocation5 + $0x30] sm:$0xff] %vm365_vm3, %v1331_v59  ;;  %v1355_v23 = vld [vmem:[#allocation3 + $0x68] ss:$2 sm:$0xff] }
 0x730   :  { %1341 = vst.msk [vmem:[#allocation5 + $0x38] sm:$0xff] %vm365_vm3, %v1333_v57  ;;  %v1403_v61 = vld [vmem:[#allocation3 + $0x29] ss:$2 sm:$0xff]  ;;  %v1357_v32 = vld [vmem:[#allocation3 + $0x78] ss:$2 sm:$0xff] }
 0x731   :  { %1422 = vrot.lane.b32.xlu1 %v1399_v49, %s2292_s9  ;;  %v1407_v6 = vld [vmem:[#allocation3 + $0x49] ss:$2 sm:$0xff]  ;;  %v1409_v45 = vld [vmem:[#allocation3 + $0x59] ss:$2 sm:$0xff] }
 0x732   :  { %1424 = vrot.lane.b32.xlu0 %v1401_v34, %s2292_s9  ;;  %2188 = vmatpush3.bf16.msra.mxu1 %v1483_v31  ;;  %v1411_v25 = vld [vmem:[#allocation3 + $0x69] ss:$2 sm:$0xff]  ;;  %v1413_v38 = vld [vmem:[#allocation3 + $0x79] ss:$2 sm:$0xff] }
 0x735   :  { %1426 = vrot.lane.b32.xlu1 %v1403_v61, %s2292_s9 }
 0x736   :  { %1428 = vrot.lane.b32.xlu0 %v1405_v52, %s2292_s9 }
 0x739   :  { %1376 = vrot.lane.b32.xlu1 %v1353_v53, %s2288_s13 }
 0x73a   :  { %1374 = vrot.lane.b32.xlu0 %v1351_v35, %s2288_s13 }
 0x73d   :  { %1378 = vrot.lane.b32.xlu1 %v1355_v23, %s2288_s13 }
 0x73e   :  { %1380 = vrot.lane.b32.xlu0 %v1357_v32, %s2288_s13 }
 0x741   :  { %1430 = vrot.lane.b32.xlu1 %v1407_v6, %s2292_s9 }
 0x742   :  { %1432 = vrot.lane.b32.xlu0 %v1409_v45, %s2292_s9 }
 0x745   :  { %1434 = vrot.lane.b32.xlu1 %v1411_v25, %s2292_s9 }
 0x746   :  { %1436 = vrot.lane.b32.xlu0 %v1413_v38, %s2292_s9 }
 0x79b   :  { %v1369_v21 = vpop.permute.xlu1 %1368 }
 0x79c   :  { %v1367_v33 = vpop.permute.xlu0 %1366  ;;  %1391 = vst.msk [vmem:[#allocation5 + $0x8] sm:$0xff] %vm848_vm4, %v1369_v21 }
 0x79d   :  { %1390 = vst.msk [vmem:[#allocation5] sm:$0xff] %vm848_vm4, %v1367_v33 }
 0x79f   :  { %v1371_v58 = vpop.permute.xlu1 %1370 }
 0x7a0   :  { %v1373_v46 = vpop.permute.xlu0 %1372  ;;  %1392 = vst.msk [vmem:[#allocation5 + $0x10] sm:$0xff] %vm848_vm4, %v1371_v58 }
 0x7a1   :  { %1393 = vst.msk [vmem:[#allocation5 + $0x18] sm:$0xff] %vm848_vm4, %v1373_v46 }
 0x7a3   :  { %v1423_v10 = vpop.permute.xlu1 %1422 }
 0x7a4   :  { %v1425_v37 = vpop.permute.xlu0 %1424  ;;  %1446 = vst.msk [vmem:[#allocation5] sm:$0xff] %vm961_vm5, %v1423_v10 }
 0x7a5   :  { %1447 = vst.msk [vmem:[#allocation5 + $0x8] sm:$0xff] %vm961_vm5, %v1425_v37 }
 0x7a7   :  { %v1427_v55 = vpop.permute.xlu1 %1426 }
 0x7a8   :  { %v1429_v50 = vpop.permute.xlu0 %1428  ;;  %1448 = vst.msk [vmem:[#allocation5 + $0x10] sm:$0xff] %vm961_vm5, %v1427_v55 }
 0x7a9   :  { %1449 = vst.msk [vmem:[#allocation5 + $0x18] sm:$0xff] %vm961_vm5, %v1429_v50 }
 0x7ab   :  { %v1377_v56 = vpop.permute.xlu1 %1376  ;;  %v1454_v47 = vld [vmem:[#allocation5] sm:$0xff] }
 0x7ac   :  { %v1375_v22 = vpop.permute.xlu0 %1374  ;;  %v1455_v60 = vld [vmem:[#allocation5 + $0x8] sm:$0xff]  ;;  %1395 = vst.msk [vmem:[#allocation5 + $0x28] sm:$0xff] %vm848_vm4, %v1377_v56 }
 0x7ad   :  { %1394 = vst.msk [vmem:[#allocation5 + $0x20] sm:$0xff] %vm848_vm4, %v1375_v22  ;;  %v1462_v20 = vpack.c.bf16 %v1455_v60, %v1454_v47 }
 0x7af   :  { %2189 = vmatprep.mubr.msk.bf16.mxu1 %vm1002_vm6, %v1462_v20  ;;  %v1379_v63 = vpop.permute.xlu1 %1378  ;;  %v1456_v2 = vld [vmem:[#allocation5 + $0x10] sm:$0xff] }
 0x7b0   :  { %v1381_v40 = vpop.permute.xlu0 %1380  ;;  %v1457_v4 = vld [vmem:[#allocation5 + $0x18] sm:$0xff]  ;;  %1396 = vst.msk [vmem:[#allocation5 + $0x30] sm:$0xff] %vm848_vm4, %v1379_v63 }
 0x7b1   :  { %1397 = vst.msk [vmem:[#allocation5 + $0x38] sm:$0xff] %vm848_vm4, %v1381_v40  ;;  %v1463_v7 = vpack.c.bf16 %v1457_v4, %v1456_v2 }
 0x7b3   :  { %2190 = vmatmul.mubr.msk.bf16.vlgmr.msra.gmra.mrb[16].mxu1 %vm1002_vm6, %v1463_v7  ;;  %v1431_v12 = vpop.permute.xlu1 %1430 }
 0x7b4   :  { %v1433_v9 = vpop.permute.xlu0 %1432  ;;  %1450 = vst.msk [vmem:[#allocation5 + $0x20] sm:$0xff] %vm961_vm5, %v1431_v12 }
 0x7b5   :  { %1451 = vst.msk [vmem:[#allocation5 + $0x28] sm:$0xff] %vm961_vm5, %v1433_v9 }
 0x7b7   :  { %v1435_v14 = vpop.permute.xlu1 %1434 }
 0x7b8   :  { %v1437_v13 = vpop.permute.xlu0 %1436  ;;  %1452 = vst.msk [vmem:[#allocation5 + $0x30] sm:$0xff] %vm961_vm5, %v1435_v14 }
 0x7b9   :  { %1453 = vst.msk [vmem:[#allocation5 + $0x38] sm:$0xff] %vm961_vm5, %v1437_v13 }
 0x7bb   :  { %v1458_v15 = vld [vmem:[#allocation5 + $0x20] sm:$0xff] }
 0x7bc   :  { %v1459_v18 = vld [vmem:[#allocation5 + $0x28] sm:$0xff] }
 0x7bd   :  { %v1464_v28 = vpack.c.bf16 %v1459_v18, %v1458_v15 }
 0x7bf   :  { %2193 = vmatprep.mubr.msk.bf16.mxu1 %vm1002_vm6, %v1464_v28  ;;  %v1460_v30 = vld [vmem:[#allocation5 + $0x30] sm:$0xff] }
 0x7c0   :  { %v1461_v44 = vld [vmem:[#allocation5 + $0x38] sm:$0xff] }
 0x7c1   :  { %v1465_v26 = vpack.c.bf16 %v1461_v44, %v1460_v30 }
 0x7c3   :  { %2194 = vmatmul.mubr.msk.bf16.gmra.mrb[20].mxu1 %vm1002_vm6, %v1465_v26 }
 0x7c4   :  { %2221 = vmatprep.mubr.msk.f32.mxu1 %vm2294_vm7, %v2291_v16 }
 0x886   :  { %v3120_v24 = vpop.f32.mrb[16].mxu1 }
 0x887   :  { %v3122_v27 = vpop.f32.mrb[17].mxu1  ;;  %v1591_v51 = vmul.f32 %v3120_v24, %v3120_v24  ;;  %v1570_v29 = vsel %vm365_vm3, %v3120_v24, 0.0 }
 0x888   :  { %v1589_v41 = vmul.f32 %v3122_v27, %v3122_v27  ;;  %v3126_v48 = vpop.f32.mrb[18].mxu1  ;;  %v1567_v1 = vsel %vm365_vm3, %v3122_v27, 0.0 }
 0x889   :  { %v3128_v43 = vpop.f32.mrb[19].mxu1  ;;  %v1592_v36 = vmul.f32 %v3126_v48, %v3126_v48  ;;  %v1600_v49 = vsel %vm365_vm3, %v1591_v51, 0.0  ;;  %v1572_v34 = vsel %vm365_vm3, %v3126_v48, 0.0 }
 0x88a   :  { %v1568_v8 = vsel %vm365_vm3, %v3128_v43, 0.0  ;;  %v1590_v3 = vmul.f32 %v3128_v43, %v3128_v43  ;;  %v1597_v31 = vsel %vm365_vm3, %v1589_v41, 0.0 }
 0x88b   :  { %v1569_v11 = vadd.f32 %v1568_v8, %v1567_v1  ;;  %v1602_v53 = vsel %vm365_vm3, %v1592_v36, 0.0  ;;  %v1621_v36 = vld [vmem:[%s3307_s1 + $0xa] sm:$0x1] }
 0x88c   :  { %v1598_v39 = vsel %vm365_vm3, %v1590_v3, 0.0 }
 0x88d   :  { %v1571_v57 = vadd.f32 %v1570_v29, %v1569_v11  ;;  %v1599_v59 = vadd.f32 %v1598_v39, %v1597_v31 }
 0x88f   :  { %v1601_v61 = vadd.f32 %v1600_v49, %v1599_v59  ;;  %v1573_v52 = vadd.f32 %v1572_v34, %v1571_v57 }
 0x891   :  { %v1603_v35 = vadd.f32 %v1602_v53, %v1601_v61  ;;  %v1622_v61 = vld [vmem:[%s3307_s1 + $0x12] sm:$0x1] }
 0x896   :  { %v3148_v23 = vpop.f32.mrb[20].mxu1 }
 0x897   :  { %v3150_v32 = vpop.f32.mrb[21].mxu1  ;;  %v1595_v21 = vmul.f32 %v3148_v23, %v3148_v23  ;;  %v1578_v55 = vsel %vm365_vm3, %v3148_v23, 0.0 }
 0x898   :  { %v1574_v6 = vsel %vm365_vm3, %v3150_v32, 0.0  ;;  %v1593_v45 = vmul.f32 %v3150_v32, %v3150_v32  ;;  %v3156_v25 = vpop.f32.mrb[22].mxu1 }
 0x899   :  { %v1575_v38 = vadd.f32 %v1574_v6, %v1573_v52  ;;  %v3158_v33 = vpop.f32.mrb[23].mxu1  ;;  %v1596_v22 = vmul.f32 %v3156_v25, %v3156_v25  ;;  %v1608_v20 = vsel %vm365_vm3, %v1595_v21, 0.0  ;;  %v1580_v40 = vsel %vm365_vm3, %v3156_v25, 0.0 }
 0x89a   :  { %v1604_v46 = vsel %vm365_vm3, %v1593_v45, 0.0  ;;  %v1576_v58 = vsel %vm365_vm3, %v3158_v33, 0.0  ;;  %v1594_v37 = vmul.f32 %v3158_v33, %v3158_v33 }
 0x89b   :  { %v1605_v10 = vadd.f32 %v1604_v46, %v1603_v35  ;;  %v1577_v50 = vadd.f32 %v1576_v58, %v1575_v38  ;;  %v1610_v4 = vsel %vm365_vm3, %v1596_v22, 0.0 }
 0x89c   :  { %v1606_v56 = vsel %vm365_vm3, %v1594_v37, 0.0 }
 0x89d   :  { %v1579_v47 = vadd.f32 %v1578_v55, %v1577_v50  ;;  %v1607_v60 = vadd.f32 %v1606_v56, %v1605_v10 }
 0x89f   :  { %v1581_v63 = vadd.f32 %v1580_v40, %v1579_v47  ;;  %v1609_v2 = vadd.f32 %v1608_v20, %v1607_v60 }
 0x8a1   :  { %v1582_v7 = vrot.slane %v1581_v63, 4  ;;  %v1611_v9 = vadd.f32 %v1610_v4, %v1609_v2 }
 0x8a3   :  { %v1583_v12 = vadd.f32 %v1582_v7, %v1581_v63  ;;  %v1612_v13 = vrot.slane %v1611_v9, 4 }
 0x8a5   :  { %v1584_v14 = vrot.slane %v1583_v12, 2  ;;  %v1613_v15 = vadd.f32 %v1612_v13, %v1611_v9 }
 0x8a7   :  { %v1585_v18 = vadd.f32 %v1584_v14, %v1583_v12  ;;  %v1614_v28 = vrot.slane %v1613_v15, 2 }
 0x8a9   :  { %v1586_v30 = vrot.slane %v1585_v18, 1  ;;  %v1615_v44 = vadd.f32 %v1614_v28, %v1613_v15 }
 0x8ab   :  { %v1587_v26 = vadd.f32 %v1586_v30, %v1585_v18  ;;  %v1616_v41 = vrot.slane %v1615_v44, 1 }
 0x8ad   :  { %v1588_v51 = vmul.f32 0.015625, %v1587_v26  ;;  %v1617_v1 = vadd.f32 %v1616_v41, %v1615_v44 }
 0x8af   :  { %v1618_v8 = vmul.f32 0.015625, %v1617_v1  ;;  %v1619_v3 = vmul.f32 %v1588_v51, %v1588_v51 }
 0x8b1   :  { %v1620_v11 = vsub.f32 %v1618_v8, %v1619_v3 }
 0x8b3   :  { %v1623_v29 = vadd.f32 1e-05, %v1620_v11 }
 0x8b5   :  { %2260 = vrsqrt.f32 %v1623_v29 }
 0x8bf   :  { %v2261_v31 = vpop.eup %2260 }
 0x8c0   :  { %1626 = vrot.lane.b32.xlu1 %v2261_v31, %s2290_s0 }
 0x932   :  { %v1627_v39 = vpop.permute.xlu1 %1626 }
 0x933   :  { %v1629_v57 = vmul.f32 %v1627_v39, %v1621_v36 }
 0x935   :  { %1631 = vrot.lane.b32.xlu0 %v1629_v57, %s2288_s13  ;;  %v1643_v59 = vrot.slane %v1629_v57, %v2608_v62 }
 0x939   :  { %1645 = vrot.lane.b32.xlu0 %v1643_v59, %s2288_s13 }
 0x93d   :  { %1763 = vrot.lane.b32.xlu0 %v2631_v19, %s2292_s9 }
 0x941   :  { %1767 = vrot.lane.b32.xlu0 %v2783_v0, %s2292_s9 }
 0x9a7   :  { %v1632_v49 = vpop.permute.xlu0 %1631 }
 0x9a8   :  { %v1634_v34 = vmul.f32 %v1632_v49, %v1588_v51 }
 0x9aa   :  { %1636 = vrot.lane.b32.xlu1 %v1634_v34, %s2290_s0 }
 0x9ab   :  { %v1646_v19 = vpop.permute.xlu0 %1645 }
 0x9ac   :  { %v1648_v6 = vmul.f32 %v1646_v19, %v3122_v27  ;;  %v1649_v45 = vmul.f32 %v1646_v19, %v3128_v43  ;;  %v1650_v38 = vmul.f32 %v3120_v24, %v1646_v19  ;;  %v1651_v21 = vmul.f32 %v3126_v48, %v1646_v19 }
 0x9ad   :  { %v1652_v46 = vmul.f32 %v1646_v19, %v3150_v32  ;;  %v1653_v58 = vmul.f32 %v1646_v19, %v3158_v33 }
 0x9af   :  { %v1764_v0 = vpop.permute.xlu0 %1763 }
 0x9b0   :  { %2197 = vmatprep.subr.bf16.mxu0 %v1764_v0 }
 0x9b1   :  { %2198 = vmatpush3.bf16.msra.mxu0 %v1764_v0 }
 0x9b3   :  { %v1768_v2 = vpop.permute.xlu0 %1767 }
 0xa1c   :  { %v1637_v52 = vpop.permute.xlu1 %1636 }
 0xa1d   :  { %v1639_v53 = vsub.f32 %v1622_v61, %v1637_v52 }
 0xa1f   :  { %v1659_v35 = vrot.slane %v1639_v53, %v2608_v62 }
 0xa21   :  { %1661 = vrot.lane.b32.xlu1 %v1659_v35, %s2288_s13 }
 0xa25   :  { %1765 = vrot.lane.b32.xlu1 %v2771_v5, %s2292_s9  ;;  %v1654_v5 = vmul.f32 %v3148_v23, %v1646_v19 }
 0xa29   :  { %1769 = vrot.lane.b32.xlu1 %v2792_v54, %s2292_s9  ;;  %v1655_v54 = vmul.f32 %v3156_v25, %v1646_v19 }
 0xa93   :  { %v1662_v37 = vpop.permute.xlu1 %1661 }
 0xa94   :  { %v1664_v10 = vadd.f32 %v1662_v37, %v1648_v6  ;;  %v1665_v50 = vadd.f32 %v1662_v37, %v1649_v45  ;;  %v1666_v55 = vadd.f32 %v1662_v37, %v1650_v38  ;;  %v1667_v22 = vadd.f32 %v1662_v37, %v1651_v21 }
 0xa95   :  { %v1668_v27 = vadd.f32 %v1662_v37, %v1652_v46  ;;  %v1669_v56 = vadd.f32 %v1662_v37, %v1653_v58  ;;  %v1670_v43 = vadd.f32 %v1662_v37, %v1654_v5  ;;  %v1671_v47 = vadd.f32 %v1662_v37, %v1655_v54 }
 0xa96   :  { %v1672_v24 = vmax.f32 %v1664_v10, 0.0  ;;  %v1673_v60 = vmax.f32 %v1665_v50, 0.0  ;;  %v1674_v48 = vmax.f32 %v1666_v55, 0.0  ;;  %v1675_v20 = vmax.f32 %v1667_v22, 0.0 }
 0xa97   :  { %v1676_v32 = vmax.f32 %v1668_v27, 0.0  ;;  %v1677_v40 = vmax.f32 %v1669_v56, 0.0  ;;  %v1678_v33 = vmax.f32 %v1670_v43, 0.0  ;;  %v1679_v63 = vmax.f32 %v1671_v47, 0.0  ;;  %v1766_v23 = vpop.permute.xlu1 %1765 }
 0xa98   :  { %1681 = vst.msk [vmem:[#allocation4 + $0x8] sm:$0xff] %vm365_vm3, %v1672_v24  ;;  %1682 = vst.msk [vmem:[#allocation4 + $0x10] sm:$0xff] %vm365_vm3, %v1673_v60  ;;  %2199 = vmatprep.subr.bf16.mxu0 %v1766_v23 }
 0xa99   :  { %1683 = vst.msk [vmem:[#allocation4 + $0x18] sm:$0xff] %vm365_vm3, %v1674_v48  ;;  %1684 = vst.msk [vmem:[#allocation4 + $0x20] sm:$0xff] %vm365_vm3, %v1675_v20  ;;  %2200 = vmatpush3.bf16.msra.mxu0 %v1766_v23 }
 0xa9a   :  { %1685 = vst.msk [vmem:[#allocation4 + $0x28] sm:$0xff] %vm365_vm3, %v1676_v32  ;;  %1686 = vst.msk [vmem:[#allocation4 + $0x30] sm:$0xff] %vm365_vm3, %v1677_v40  ;;  %2201 = vmatprep.subr.bf16.mxu0 %v1768_v2 }
 0xa9b   :  { %1687 = vst.msk [vmem:[#allocation4 + $0x38] sm:$0xff] %vm365_vm3, %v1678_v33  ;;  %1688 = vst.msk [vmem:[#allocation4 + $0x40] sm:$0xff] %vm365_vm3, %v1679_v63  ;;  %v1770_v25 = vpop.permute.xlu1 %1769 }
 0xa9d   :  { %2202 = vmatpush3.bf16.msra.mxu0 %v1768_v2 }
 0xa9e   :  { %2203 = vmatprep.subr.bf16.mxu0 %v1770_v25 }
 0xa9f   :  { %v1702_v7 = vld [vmem:[#allocation4 + $0x8] ss:$2 sm:$0xff]  ;;  %v1690_v9 = vld [vmem:[#allocation4 + $0x7] ss:$2 sm:$0xff] }
 0xaa0   :  { %v1704_v4 = vld [vmem:[#allocation4 + $0x18] ss:$2 sm:$0xff]  ;;  %1713 = vrot.lane.b32.xlu1 %v1702_v7, %s2288_s13  ;;  %1697 = vst.msk [vmem:[#allocation5] sm:$0xff] %vm365_vm3, %v1690_v9  ;;  %v1692_v12 = vld [vmem:[#allocation4 + $0x17] ss:$2 sm:$0xff] }
 0xaa1   :  { %1715 = vrot.lane.b32.xlu0 %v1704_v4, %s2288_s13  ;;  %2204 = vmatpush3.bf16.msra.mxu0 %v1770_v25  ;;  %v1694_v14 = vld [vmem:[#allocation4 + $0x27] ss:$2 sm:$0xff]  ;;  %v1706_v15 = vld [vmem:[#allocation4 + $0x28] ss:$2 sm:$0xff]  ;;  %1698 = vst.msk [vmem:[#allocation5 + $0x8] sm:$0xff] %vm365_vm3, %v1692_v12 }
 0xaa2   :  { %v1696_v13 = vld [vmem:[#allocation4 + $0x37] ss:$2 sm:$0xff]  ;;  %v1708_v18 = vld [vmem:[#allocation4 + $0x38] ss:$2 sm:$0xff]  ;;  %1699 = vst.msk [vmem:[#allocation5 + $0x10] sm:$0xff] %vm365_vm3, %v1694_v14 }
 0xaa3   :  { %1700 = vst.msk [vmem:[#allocation5 + $0x18] sm:$0xff] %vm365_vm3, %v1696_v13  ;;  %v1730_v28 = vld [vmem:[#allocation4 + $0x9] ss:$2 sm:$0xff]  ;;  %v1732_v30 = vld [vmem:[#allocation4 + $0x19] ss:$2 sm:$0xff] }
 0xaa4   :  { %1719 = vrot.lane.b32.xlu1 %v1708_v18, %s2288_s13  ;;  %v1734_v44 = vld [vmem:[#allocation4 + $0x29] ss:$2 sm:$0xff]  ;;  %v1736_v26 = vld [vmem:[#allocation4 + $0x39] ss:$2 sm:$0xff] }
 0xaa5   :  { %1717 = vrot.lane.b32.xlu0 %v1706_v15, %s2288_s13  ;;  %v1870_v15 = vld [vmem:[%s3307_s1 + $0xb] sm:$0x1] }
 0xaa8   :  { %1743 = vrot.lane.b32.xlu1 %v1732_v30, %s2292_s9 }
 0xaa9   :  { %1741 = vrot.lane.b32.xlu0 %v1730_v28, %s2292_s9 }
 0xaac   :  { %1747 = vrot.lane.b32.xlu1 %v1736_v26, %s2292_s9 }
 0xaad   :  { %1745 = vrot.lane.b32.xlu0 %v1734_v44, %s2292_s9  ;;  %v1917_v44 = vld [vmem:[%s3307_s1 + $0x18] sm:$0xff] }
 0xab0   :  { %1773 = vrot.lane.b32.xlu1 %v2828_v42, %s2292_s9 }
 0xab1   :  { %1771 = vrot.lane.b32.xlu0 %v2814_v17, %s2292_s9 }
 0xb12   :  { %v1714_v41 = vpop.permute.xlu1 %1713 }
 0xb13   :  { %v1716_v51 = vpop.permute.xlu0 %1715  ;;  %1725 = vst.msk [vmem:[#allocation5] sm:$0xff] %vm848_vm4, %v1714_v41 }
 0xb14   :  { %1726 = vst.msk [vmem:[#allocation5 + $0x8] sm:$0xff] %vm848_vm4, %v1716_v51  ;;  %v2293_v51 = vmov 0.0|0.0  }
 0xb15   :  { %2224 = vmatprep.subr.bf16.mxu1 %v2293_v51 }
 0xb16   :  { %v1720_v1 = vpop.permute.xlu1 %1719 }
 0xb17   :  { %v1718_v8 = vpop.permute.xlu0 %1717  ;;  %1728 = vst.msk [vmem:[#allocation5 + $0x18] sm:$0xff] %vm848_vm4, %v1720_v1  ;;  %v1871_v1 = vld [vmem:[%s3307_s1 + $0x13] sm:$0x1] }
 0xb18   :  { %1727 = vst.msk [vmem:[#allocation5 + $0x10] sm:$0xff] %vm848_vm4, %v1718_v8 }
 0xb1a   :  { %v1744_v3 = vpop.permute.xlu1 %1743 }
 0xb1b   :  { %v1742_v11 = vpop.permute.xlu0 %1741  ;;  %1754 = vst.msk [vmem:[#allocation5 + $0x8] sm:$0xff] %vm961_vm5, %v1744_v3 }
 0xb1c   :  { %1753 = vst.msk [vmem:[#allocation5] sm:$0xff] %vm961_vm5, %v1742_v11 }
 0xb1e   :  { %v1748_v17 = vpop.permute.xlu1 %1747 }
 0xb1f   :  { %v1746_v42 = vpop.permute.xlu0 %1745  ;;  %1756 = vst.msk [vmem:[#allocation5 + $0x18] sm:$0xff] %vm961_vm5, %v1748_v17  ;;  %v2295_v17 = vmov 96  }
 0xb20   :  { %1755 = vst.msk [vmem:[#allocation5 + $0x10] sm:$0xff] %vm961_vm5, %v1746_v42  ;;  %2239 = vset.pattern.permute.xlu0 %v2295_v17  ;;  %v1918_v42 = vld [vmem:[%s3307_s1 + $0x28] sm:$0xff]  ;;  %s2296_s1 = smov [#allocation6]  }
 0xb22   :  { %v1758_v36 = vld [vmem:[#allocation5 + $0x8] sm:$0xff]  ;;  %v1774_v39 = vpop.permute.xlu1 %1773 }
 0xb23   :  { %v1772_v29 = vpop.permute.xlu0 %1771  ;;  %v1757_v31 = vld [vmem:[#allocation5] sm:$0xff] }
 0xb24   :  { %2205 = vmatprep.subr.bf16.mxu0 %v1772_v29  ;;  %v1761_v57 = vpack.c.bf16 %v1758_v36, %v1757_v31 }
 0xb25   :  { %2206 = vmatpush3.bf16.msra.mxu0 %v1772_v29 }
 0xb26   :  { %2209 = vmatprep.mubr.msk.bf16.mxu0 %vm1002_vm6, %v1761_v57  ;;  %2207 = vmatprep.subr.bf16.mxu0 %v1774_v39  ;;  %v1760_v49 = vld [vmem:[#allocation5 + $0x18] sm:$0xff] }
 0xb27   :  { %v1759_v59 = vld [vmem:[#allocation5 + $0x10] sm:$0xff] }
 0xb28   :  { %v1762_v34 = vpack.c.bf16 %v1760_v49, %v1759_v59 }
 0xb29   :  { %2208 = vmatpush3.bf16.msra.mxu0 %v1774_v39 }
 0xb2c   :  { %2210 = vmatmul.mubr.msk.bf16.vlgmr.msra.gmra.mrb[32].mxu0 %vm1002_vm6, %v1762_v34 }
 0xbff   :  { %v3239_v61 = vpop.f32.mrb[32].mxu0 }
 0xc00   :  { %v3241_v52 = vpop.f32.mrb[33].mxu0  ;;  %v1852_v0 = vmul.f32 %v3239_v61, %v3239_v61  ;;  %v1839_v46 = vsel %vm365_vm3, %v3239_v61, 0.0 }
 0xc01   :  { %v1850_v53 = vmul.f32 %v3241_v52, %v3241_v52  ;;  %v3245_v35 = vpop.f32.mrb[34].mxu0  ;;  %v1836_v6 = vsel %vm365_vm3, %v3241_v52, 0.0 }
 0xc02   :  { %v3247_v19 = vpop.f32.mrb[35].mxu0  ;;  %v1853_v5 = vmul.f32 %v3245_v35, %v3245_v35  ;;  %v1857_v50 = vsel %vm365_vm3, %v1852_v0, 0.0  ;;  %v1841_v55 = vsel %vm365_vm3, %v3245_v35, 0.0 }
 0xc03   :  { %v1837_v45 = vsel %vm365_vm3, %v3247_v19, 0.0  ;;  %v1851_v38 = vmul.f32 %v3247_v19, %v3247_v19  ;;  %v1854_v58 = vsel %vm365_vm3, %v1850_v53, 0.0 }
 0xc04   :  { %v1838_v21 = vadd.f32 %v1837_v45, %v1836_v6  ;;  %v1859_v56 = vsel %vm365_vm3, %v1853_v5, 0.0 }
 0xc05   :  { %v1855_v54 = vsel %vm365_vm3, %v1851_v38, 0.0 }
 0xc06   :  { %v1840_v37 = vadd.f32 %v1839_v46, %v1838_v21  ;;  %v1856_v10 = vadd.f32 %v1855_v54, %v1854_v58 }
 0xc08   :  { %v1842_v22 = vadd.f32 %v1841_v55, %v1840_v37  ;;  %v1858_v27 = vadd.f32 %v1857_v50, %v1856_v10 }
 0xc0a   :  { %v1843_v43 = vrot.slane %v1842_v22, 4  ;;  %v1860_v47 = vadd.f32 %v1859_v56, %v1858_v27 }
 0xc0c   :  { %v1844_v24 = vadd.f32 %v1843_v43, %v1842_v22  ;;  %v1861_v60 = vrot.slane %v1860_v47, 4 }
 0xc0e   :  { %v1845_v48 = vrot.slane %v1844_v24, 2  ;;  %v1862_v20 = vadd.f32 %v1861_v60, %v1860_v47 }
 0xc10   :  { %v1846_v32 = vadd.f32 %v1845_v48, %v1844_v24  ;;  %v1863_v40 = vrot.slane %v1862_v20, 2 }
 0xc12   :  { %v1847_v33 = vrot.slane %v1846_v32, 1  ;;  %v1864_v63 = vadd.f32 %v1863_v40, %v1862_v20 }
 0xc14   :  { %v1848_v23 = vadd.f32 %v1847_v33, %v1846_v32  ;;  %v1865_v2 = vrot.slane %v1864_v63, 1 }
 0xc16   :  { %v1849_v25 = vmul.f32 0.03125, %v1848_v23  ;;  %v1866_v4 = vadd.f32 %v1865_v2, %v1864_v63 }
 0xc18   :  { %v1867_v7 = vmul.f32 0.03125, %v1866_v4  ;;  %v1868_v9 = vmul.f32 %v1849_v25, %v1849_v25 }
 0xc1a   :  { %v1869_v12 = vsub.f32 %v1867_v7, %v1868_v9 }
 0xc1c   :  { %v1872_v13 = vadd.f32 1e-05, %v1869_v12 }
 0xc1e   :  { %2262 = vrsqrt.f32 %v1872_v13 }
 0xc28   :  { %v2263_v14 = vpop.eup %2262 }
 0xc29   :  { %1875 = vrot.lane.b32.xlu0 %v2263_v14, %s2290_s0 }
 0xc9b   :  { %v1876_v18 = vpop.permute.xlu0 %1875 }
 0xc9c   :  { %v1878_v28 = vmul.f32 %v1876_v18, %v1870_v15 }
 0xc9e   :  { %1880 = vrot.lane.b32.xlu1 %v1878_v28, %s2288_s13  ;;  %v1892_v30 = vrot.slane %v1878_v28, %v2608_v62 }
 0xca2   :  { %1894 = vrot.lane.b32.xlu1 %v1892_v30, %s2288_s13 }
 0xca6   :  { %1925 = vrot.lane.b32.xlu1 %v1917_v44, %s2288_s13 }
 0xd10   :  { %v1881_v26 = vpop.permute.xlu1 %1880 }
 0xd11   :  { %v1883_v41 = vmul.f32 %v1881_v26, %v1849_v25 }
 0xd13   :  { %1885 = vrot.lane.b32.xlu0 %v1883_v41, %s2290_s0 }
 0xd14   :  { %v1895_v29 = vpop.permute.xlu1 %1894 }
 0xd15   :  { %v1897_v31 = vmul.f32 %v1895_v29, %v3241_v52  ;;  %v1898_v36 = vmul.f32 %v1895_v29, %v3247_v19  ;;  %v1899_v39 = vmul.f32 %v3239_v61, %v1895_v29 }
 0xd18   :  { %v1926_v52 = vpop.permute.xlu1 %1925 }
 0xd85   :  { %v1886_v8 = vpop.permute.xlu0 %1885 }
 0xd86   :  { %v1888_v3 = vsub.f32 %v1871_v1, %v1886_v8 }
 0xd88   :  { %v1904_v11 = vrot.slane %v1888_v3, %v2608_v62  ;;  %v1900_v62 = vmul.f32 %v3245_v35, %v1895_v29 }
 0xd8a   :  { %1906 = vrot.lane.b32.xlu0 %v1904_v11, %s2288_s13  ;;  %s2006_s13 = sshll.u32 %s2296_s1, 4  ;;  %s2007_s13 = int_to_ptr.vmem [resolvable:$true] %s2006_s13 }
 0xd8b   :  { %s2264_s0 = scalar_lea.vmem %s2007_s13, 128  ;;  %p2269_p1 = scmp.lt.s32.totalorder %s2007_s13, %s2007_s13 }
 0xd8c   :  { %p2265_p0 = scmp.ne.s32.totalorder %s2007_s13, %s2264_s0  ;;  %p2270_p2 = scmp.lt.s32.totalorder %s2264_s0, %s2264_s0 }
 0xd8e   :  { %1921 = vperm.xlu0 %2239, %v1918_v42   ;;  %p2271_p3 = por %p2270_p2, %p2269_p1 }
 0xd90   :  { %p2272_p4 = pnand %p2271_p3, %p2265_p0 }
 0xdfc   :  { %v1907_v57 = vpop.permute.xlu0 %1906 }
 0xdfd   :  { %v1909_v16 = vadd.f32 %v1907_v57, %v1897_v31  ;;  %v1910_v59 = vadd.f32 %v1907_v57, %v1898_v36  ;;  %v1911_v49 = vadd.f32 %v1907_v57, %v1899_v39  ;;  %v1912_v34 = vadd.f32 %v1907_v57, %v1900_v62 }
 0xdff   :  { %v1913_v53 = vmax.f32 %v1909_v16, 0.0  ;;  %v1914_v0 = vmax.f32 %v1910_v59, 0.0  ;;  %v1915_v6 = vmax.f32 %v1911_v49, 0.0  ;;  %v1916_v45 = vmax.f32 %v1912_v34, 0.0 }
 0xe01   :  { %v2225_v38 = vpack.c.bf16 %v1914_v0, %v1913_v53  ;;  %v2228_v21 = vpack.c.bf16 %v1916_v45, %v1915_v6 }
 0xe03   :  { %2226 = vmatpush3.bf16.msra.mxu1 %v2225_v38 }
 0xe04   :  { %2227 = vmatprep.subr.bf16.mxu1 %v2293_v51 }
 0xe07   :  { %2229 = vmatpush3.bf16.msra.mxu1 %v2228_v21 }
 0xe0a   :  { %2222 = vmatmul.mubr.msk.f32.vlgmr.msra.gmra.mrb[24].mxu1 %vm365_vm3, %v1926_v52 }
 0xe0d   :  { %v1922_v61 = vpop.permute.xlu0 %1921 }
 0xedd   :  { %v1995_v35 = vpop.f32.mrb[24].mxu1 }
 0xede   :  { %v1996_v19 = vadd.f32 %v1995_v35, %v1922_v61  ;;  %v2223_v46 = vpop.f32.mrb[25].mxu1 }
 0xee0   :  { %1999 = vst.msk [vmem:[#allocation6] sm:$0xff] %vm365_vm3, %v1996_v19 }
 0xee1   :  { %2275 = shalt.err (!%p2272_p4)
}
 0xee2   :  { %s2276_s9 = scalar_lea.hbm %s3308_s2, 128 }
 0xee3   :  { %p2277_p5 = scmp.ne.s32.totalorder %s3308_s2, %s2276_s9  ;;  %p2280_p6 = scmp.lt.u32.totalorder %s2276_s9, %s3308_s2 }
 0xee5   :  { %p2282_p7 = pnand %p2280_p6, %p2277_p5 }
 0xee7   :  { %2285 = shalt.err (!%p2282_p7)
}
 0xee8   :  { %2009 = dma.vmem_to_hbm [thread:$0]  %s2007_s13, 128, %s3308_s2, [#allocation7]  }
 0xee9   :  { %2286 = dma.done.wait [#allocation7], 128  }
 0xeea   :  { %2287 = vsyncadd [#allocation7], 4294967168 }
 0xeeb   :  { %2013 = vsyncpa [#allocation7], 1 }

</bundles_post_ra>
